<compile_context>
chip_gen: v7x
topology: tpu7x:2x2x1
jax: 0.10.0
libtpu: 0.0.40
codegen_flags: <defaults>
</compile_context>

<pallas_src>
import functools
import math

import jax
import jax.numpy as jnp
from jax.experimental import pallas as pl
from jax.experimental.pallas import tpu as pltpu

FILTER_SIZE = 11
HALO = FILTER_SIZE - 1          # "valid" filtering shrinks each spatial axis by 10
SIGMA = 1.5
K1 = 0.01 ** 2
K2 = 0.03 ** 2


def _gauss_1d(size: int, sigma: float):
    """1-D normalized Gaussian taps (fspecial_gauss(size, sigma) == outer(g, g))."""
    center = size // 2
    vals = [math.exp(-((i - center) ** 2) / (2.0 * sigma ** 2)) for i in range(size)]
    s = sum(vals)
    return tuple(v / s for v in vals)


def _band_matrix(in_len: int, taps) -> jax.Array:
    """Banded Toeplitz B of shape (in_len, in_len - k + 1) with B[r, c] = g[r - c]."""
    k = len(taps)
    out_len = in_len - k + 1
    r = jnp.arange(in_len)[:, None]
    c = jnp.arange(out_len)[None, :]
    d = r - c
    t = jnp.asarray(taps, jnp.float32)
    vals = t[jnp.clip(d, 0, k - 1)]
    return jnp.where((d >= 0) & (d < k), vals, 0.0).astype(jnp.float32)


# ---------------------------------------------------------------------------
# Generation-aware device heuristics (tiling / VMEM budgeting).
# ---------------------------------------------------------------------------
def _device_kind() -> str:
    try:
        return jax.devices()[0].device_kind.lower()
    except Exception:
        return ""


def _vmem_capacity_bytes() -> int:
    cap = 64 * 1024 * 1024                       # conservative fallback (v7x per-core)
    try:
        cap = int(pltpu.get_tpu_info().vmem_capacity_bytes)
    except Exception:
        pass
    if "v7" in _device_kind():                   # v7x: 64 MiB per TensorCore
        cap = min(cap, 64 * 1024 * 1024)
    return cap


def _num_tensorcores() -> int:
    kind = _device_kind()
    return 2 if any(tag in kind for tag in ("v7", "v4", "v5p")) else 1


def _mxu_tile() -> int:
    kind = _device_kind()
    # v5e MXUs are 128x128; v6e/v7x are 256x256.
    return 128 if ("lite" in kind or "v5e" in kind) else 256


# ---------------------------------------------------------------------------
# In-kernel helpers.
# ---------------------------------------------------------------------------
def _banded_matmul_rhs(x2d, band, out_len):
    """Valid Gaussian filtering along the LAST axis via K-blocked MXU matmuls.

    x2d:  (M, out_len + HALO) f32
    band: (tile + HALO, tile) compact Toeplitz band, band[r, c] = g[r - c]
    Returns (M, out_len): each tile contracts only tile+HALO input columns.
    """
    tile = band.shape[1]
    pieces = []
    for c0 in range(0, out_len, tile):
        tc = min(tile, out_len - c0)
        b = band if tc == tile else band[:tc + HALO, :tc]
        pieces.append(jnp.dot(x2d[:, c0:c0 + tc + HALO], b,
                              preferred_element_type=jnp.float32))
    return pieces[0] if len(pieces) == 1 else jnp.concatenate(pieces, axis=1)


def _banded_matmul_lhs(band, x2d, out_len):
    """Valid Gaussian filtering along the FIRST axis, band as the shared LHS.

    band: (tile, tile + HALO) compact Toeplitz band, band[o, r] = g[r - o]
    x2d:  (out_len + HALO, N) f32
    Returns (out_len, N).  The band is never broadcast per plane.
    """
    tile = band.shape[0]
    pieces = []
    for r0 in range(0, out_len, tile):
        tr = min(tile, out_len - r0)
        b = band if tr == tile else band[:tr, :tr + HALO]
        pieces.append(jnp.dot(b, x2d[r0:r0 + tr + HALO, :],
                              preferred_element_type=jnp.float32))
    return pieces[0] if len(pieces) == 1 else jnp.concatenate(pieces, axis=0)


def _fast_reciprocal(x):
    """EUP approximate reciprocal + one Newton step (f32-accurate, off the VALU)."""
    r = pl.reciprocal(x, approx=True)
    return r * (2.0 - x * r)


def _ssim_kernel(bh_ref, bv_ref, src_ref, tgt_ref, out_ref, *, k1, k2):
    """One block of pb planes: Gaussian filtering on the MXU + SSIM map + mean."""
    s = src_ref[...].astype(jnp.float32)            # (pb, H, W)
    t = tgt_ref[...].astype(jnp.float32)            # (pb, H, W)
    bh = bh_ref[...]                                # (tcw+HALO, tcw) resident band
    bv = bv_ref[...]                                # (tch, tch+HALO) resident band
    pb, h, w = s.shape
    wo = w - HALO
    ho = h - HALO

    def gfilter(x):                                 # x: (pb, H, W)
        # Horizontal pass: one stacked 2-D matmul (M = pb*H) per column tile.
        y = _banded_matmul_rhs(x.reshape(pb * h, w), bh, wo).reshape(pb, h, wo)
        # Vertical pass: shared-LHS 2-D matmuls, one per plane, K-blocked.
        return jnp.stack([_banded_matmul_lhs(bv, y[p], ho) for p in range(pb)],
                         axis=0)                    # (pb, Ho, Wo)

    # Stream the five filter inputs one at a time (keeps peak VMEM low; only
    # the five small post-filter maps stay resident).
    mu1 = gfilter(s)
    mu2 = gfilter(t)
    e_ss = gfilter(s * s)
    e_tt = gfilter(t * t)
    e_st = gfilter(s * t)

    mu1_sq = mu1 * mu1
    mu2_sq = mu2 * mu2
    mu1_mu2 = mu1 * mu2
    sigma1_sq = e_ss - mu1_sq
    sigma2_sq = e_tt - mu2_sq
    sigma12 = e_st - mu1_mu2

    cs_map = jnp.maximum(
        (2.0 * sigma12 + k2) * _fast_reciprocal(sigma1_sq + sigma2_sq + k2), 0.0)
    ssim_map = (2.0 * mu1_mu2 + k1) * _fast_reciprocal(mu1_sq + mu2_sq + k1) * cs_map

    # Per-plane spatial mean, written as a lane-dense (1, pb) row.
    sums = jnp.sum(jnp.sum(ssim_map, axis=2), axis=1, keepdims=True)   # (pb, 1)
    out_ref[...] = sums.T * (1.0 / float(ho * wo))


# ---------------------------------------------------------------------------
# Wrapper.
# ---------------------------------------------------------------------------
def _choose_planes_per_step(n_planes, h, w, ho, wo, vmem_capacity, n_cores):
    # f32 per-plane working set: double-buffered src/tgt input blocks (4*h*w),
    # casts + one product (3*h*w), horizontal intermediate (h*wo), five
    # filtered maps + SSIM temporaries (~8*ho*wo).
    per_plane = 4 * (4 * h * w + 3 * h * w + h * wo + 8 * ho * wo)
    budget = int(0.35 * vmem_capacity)
    pb = max(1, min(n_planes, budget // max(per_plane, 1)))
    if n_cores > 1 and n_planes >= n_cores:
        pb = min(pb, n_planes // n_cores)    # keep >= n_cores grid steps
    while n_planes % pb:                     # divisor => no host-side padding copy
        pb -= 1
    return int(pb)


def ssim_pallas(source: jax.Array, target: jax.Array) -> jax.Array:
    """SSIM.forward: scalar mean SSIM over the batch (NCHW inputs)."""
    assert source.shape == target.shape
    n, c, h, w = source.shape
    assert h >= FILTER_SIZE and w >= FILTER_SIZE
    ho, wo = h - HALO, w - HALO
    p = n * c

    g = _gauss_1d(FILTER_SIZE, SIGMA)
    vmem_cap = _vmem_capacity_bytes()
    mxu = _mxu_tile()
    tcw = min(mxu, wo)
    tch = min(mxu, ho)
    # Compact Toeplitz band blocks (resident in VMEM, reused for every tile).
    bh_band = _band_matrix(tcw + HALO, g)          # (tcw+HALO, tcw)  RHS band
    bv_band = _band_matrix(tch + HALO, g).T        # (tch, tch+HALO)  LHS band

    pb = _choose_planes_per_step(p, h, w, ho, wo, vmem_cap, _num_tensorcores())
    steps = p // pb                                # exact: pb divides p

    src = source.reshape(p, h, w)                  # free reshape, no padding copy
    tgt = target.reshape(p, h, w)

    kernel = functools.partial(_ssim_kernel, k1=K1, k2=K2)

    band_h_spec = pl.BlockSpec((tcw + HALO, tcw), lambda i: (0, 0))   # resident
    band_v_spec = pl.BlockSpec((tch, tch + HALO), lambda i: (0, 0))   # resident
    plane_spec = pl.BlockSpec((pb, h, w), lambda i: (i, 0, 0))
    out_spec = pl.BlockSpec((None, 1, pb), lambda i: (i, 0, 0))

    vmem_limit = int(0.8 * vmem_cap)               # headroom for compiler scratch

    per_plane_means = pl.pallas_call(
        kernel,
        out_shape=jax.ShapeDtypeStruct((steps, 1, pb), jnp.float32),
        grid_spec=pltpu.PrefetchScalarGridSpec(
            num_scalar_prefetch=0,
            grid=(steps,),
            in_specs=[band_h_spec, band_v_spec, plane_spec, plane_spec],
            out_specs=out_spec,
        ),
        compiler_params=pltpu.CompilerParams(
            dimension_semantics=("parallel",),
            vmem_limit_bytes=vmem_limit,
        ),
    )(bh_band, bv_band, src, tgt)

    # Equal pixel count per plane => mean of per-plane means equals the global
    # mean over (N, C, Ho, Wo), which equals torch.mean(ssim(...)).
    return jnp.mean(per_plane_means)


def _ssim_reference(source, target):
    """Pure-JAX reference (depthwise valid conv) for a sanity check."""
    g1d = jnp.asarray(_gauss_1d(FILTER_SIZE, SIGMA), jnp.float32)
    w2d = jnp.outer(g1d, g1d)                     # (11, 11)
    n, c, h, w = source.shape
    filt = jnp.broadcast_to(w2d[None, None], (c, 1, FILTER_SIZE, FILTER_SIZE))

    def gfilter(x):
        return jax.lax.conv_general_dilated(
            x, filt, window_strides=(1, 1), padding="VALID",
            dimension_numbers=("NCHW", "OIHW", "NCHW"), feature_group_count=c,
            precision=jax.lax.Precision.HIGHEST)

    s = source.astype(jnp.float32)
    t = target.astype(jnp.float32)
    mu1, mu2 = gfilter(s), gfilter(t)
    mu1_sq, mu2_sq, mu1_mu2 = mu1 * mu1, mu2 * mu2, mu1 * mu2
    sigma1_sq = gfilter(s * s) - mu1_sq
    sigma2_sq = gfilter(t * t) - mu2_sq
    sigma12 = gfilter(s * t) - mu1_mu2
    cs_map = jnp.maximum((2 * sigma12 + K2) / (sigma1_sq + sigma2_sq + K2), 0.0)
    ssim_map = (2 * mu1_mu2 + K1) / (mu1_sq + mu2_sq + K1) * cs_map
    return jnp.mean(jnp.mean(ssim_map, axis=(1, 2, 3)))


if __name__ == "__main__":
    key = jax.random.PRNGKey(0)
    k_src, k_tgt = jax.random.split(key)
    N, C, H, W = 2, 4, 16, 16
    source = jax.random.uniform(k_src, (N, C, H, W), dtype=jnp.float32)
    # Target = slightly perturbed source, like a reconstructed image.
    target = jnp.clip(
        source + 0.05 * jax.random.normal(k_tgt, (N, C, H, W), dtype=jnp.float32),
        0.0, 1.0)

    out = jax.block_until_ready(ssim_pallas(source, target))
    ref = jax.block_until_ready(_ssim_reference(source, target))

    assert out.shape == ()
    assert bool(jnp.isfinite(out))
    assert jnp.allclose(out, ref, rtol=1e-3, atol=1e-3), (out, ref)
    print("KERNEL_OK")
</pallas_src>

<mosaic_0001>
module attributes {stable_mosaic.version = 11 : i64} {
  func.func @_ssim_kernel(%arg0: i32, %arg1: memref<16x6xf32, #tpu.memory_space<vmem>>, %arg2: memref<6x16xf32, #tpu.memory_space<vmem>>, %arg3: memref<8x16x16xf32, #tpu.memory_space<vmem>>, %arg4: memref<8x16x16xf32, #tpu.memory_space<vmem>>, %arg5: memref<1x1x8xf32, #tpu.memory_space<vmem>>) attributes {dimension_semantics = [#tpu.dimension_semantics<parallel>], iteration_bounds = array<i64: 1>, scalar_prefetch = 0 : i64, scratch_operands = 0 : i64, tpu.core_type = #tpu.core_type<tc>, window_params = [{pipeline_mode = #tpu.pipeline_mode<synchronous>, transform_indices = @transform_0, window_bounds = array<i64: 16, 6>}, {pipeline_mode = #tpu.pipeline_mode<synchronous>, transform_indices = @transform_1, window_bounds = array<i64: 6, 16>}, {transform_indices = @transform_2, window_bounds = array<i64: 8, 16, 16>}, {transform_indices = @transform_3, window_bounds = array<i64: 8, 16, 16>}, {transform_indices = @transform_4, window_bounds = array<i64: 1, 1, 8>}]} {
    %c0 = arith.constant 0 : index
    %c0_0 = arith.constant 0 : index
    %c0_1 = arith.constant 0 : index
    %0 = vector.load %arg3[%c0, %c0_0, %c0_1] : memref<8x16x16xf32, #tpu.memory_space<vmem>>, vector<8x16x16xf32>
    %c0_2 = arith.constant 0 : index
    %c0_3 = arith.constant 0 : index
    %c0_4 = arith.constant 0 : index
    %1 = vector.load %arg4[%c0_2, %c0_3, %c0_4] : memref<8x16x16xf32, #tpu.memory_space<vmem>>, vector<8x16x16xf32>
    %c0_5 = arith.constant 0 : index
    %c0_6 = arith.constant 0 : index
    %2 = vector.load %arg1[%c0_5, %c0_6] : memref<16x6xf32, #tpu.memory_space<vmem>>, vector<16x6xf32>
    %c0_7 = arith.constant 0 : index
    %c0_8 = arith.constant 0 : index
    %3 = vector.load %arg2[%c0_7, %c0_8] : memref<6x16xf32, #tpu.memory_space<vmem>>, vector<6x16xf32>
    %4 = vector.shape_cast %0 : vector<8x16x16xf32> to vector<128x16xf32>
    %cst = arith.constant dense<0.000000e+00> : vector<128x6xf32>
    %5 = tpu.matmul %4, %2, %cst {dimension_numbers = #tpu.dot_dimension_numbers<[1], [0], [0], [1], [0, 0, 1, 1], [], []>} : vector<128x16xf32>, vector<16x6xf32>, vector<128x6xf32> -> vector<128x6xf32>
    %6 = vector.shape_cast %5 : vector<128x6xf32> to vector<8x16x6xf32>
    %7 = vector.extract_strided_slice %6 {offsets = [0, 0, 0], sizes = [1, 16, 6], strides = [1, 1, 1]} : vector<8x16x6xf32> to vector<1x16x6xf32>
    %8 = vector.shape_cast %7 : vector<1x16x6xf32> to vector<16x6xf32>
    %cst_9 = arith.constant dense<0.000000e+00> : vector<6x6xf32>
    %9 = tpu.matmul %3, %8, %cst_9 {dimension_numbers = #tpu.dot_dimension_numbers<[1], [0], [0], [1], [0, 0, 1, 1], [], []>} : vector<6x16xf32>, vector<16x6xf32>, vector<6x6xf32> -> vector<6x6xf32>
    %10 = vector.extract_strided_slice %6 {offsets = [1, 0, 0], sizes = [1, 16, 6], strides = [1, 1, 1]} : vector<8x16x6xf32> to vector<1x16x6xf32>
    %11 = vector.shape_cast %10 : vector<1x16x6xf32> to vector<16x6xf32>
    %cst_10 = arith.constant dense<0.000000e+00> : vector<6x6xf32>
    %12 = tpu.matmul %3, %11, %cst_10 {dimension_numbers = #tpu.dot_dimension_numbers<[1], [0], [0], [1], [0, 0, 1, 1], [], []>} : vector<6x16xf32>, vector<16x6xf32>, vector<6x6xf32> -> vector<6x6xf32>
    %13 = vector.extract_strided_slice %6 {offsets = [2, 0, 0], sizes = [1, 16, 6], strides = [1, 1, 1]} : vector<8x16x6xf32> to vector<1x16x6xf32>
    %14 = vector.shape_cast %13 : vector<1x16x6xf32> to vector<16x6xf32>
    %cst_11 = arith.constant dense<0.000000e+00> : vector<6x6xf32>
    %15 = tpu.matmul %3, %14, %cst_11 {dimension_numbers = #tpu.dot_dimension_numbers<[1], [0], [0], [1], [0, 0, 1, 1], [], []>} : vector<6x16xf32>, vector<16x6xf32>, vector<6x6xf32> -> vector<6x6xf32>
    %16 = vector.extract_strided_slice %6 {offsets = [3, 0, 0], sizes = [1, 16, 6], strides = [1, 1, 1]} : vector<8x16x6xf32> to vector<1x16x6xf32>
    %17 = vector.shape_cast %16 : vector<1x16x6xf32> to vector<16x6xf32>
    %cst_12 = arith.constant dense<0.000000e+00> : vector<6x6xf32>
    %18 = tpu.matmul %3, %17, %cst_12 {dimension_numbers = #tpu.dot_dimension_numbers<[1], [0], [0], [1], [0, 0, 1, 1], [], []>} : vector<6x16xf32>, vector<16x6xf32>, vector<6x6xf32> -> vector<6x6xf32>
    %19 = vector.extract_strided_slice %6 {offsets = [4, 0, 0], sizes = [1, 16, 6], strides = [1, 1, 1]} : vector<8x16x6xf32> to vector<1x16x6xf32>
    %20 = vector.shape_cast %19 : vector<1x16x6xf32> to vector<16x6xf32>
    %cst_13 = arith.constant dense<0.000000e+00> : vector<6x6xf32>
    %21 = tpu.matmul %3, %20, %cst_13 {dimension_numbers = #tpu.dot_dimension_numbers<[1], [0], [0], [1], [0, 0, 1, 1], [], []>} : vector<6x16xf32>, vector<16x6xf32>, vector<6x6xf32> -> vector<6x6xf32>
    %22 = vector.extract_strided_slice %6 {offsets = [5, 0, 0], sizes = [1, 16, 6], strides = [1, 1, 1]} : vector<8x16x6xf32> to vector<1x16x6xf32>
    %23 = vector.shape_cast %22 : vector<1x16x6xf32> to vector<16x6xf32>
    %cst_14 = arith.constant dense<0.000000e+00> : vector<6x6xf32>
    %24 = tpu.matmul %3, %23, %cst_14 {dimension_numbers = #tpu.dot_dimension_numbers<[1], [0], [0], [1], [0, 0, 1, 1], [], []>} : vector<6x16xf32>, vector<16x6xf32>, vector<6x6xf32> -> vector<6x6xf32>
    %25 = vector.extract_strided_slice %6 {offsets = [6, 0, 0], sizes = [1, 16, 6], strides = [1, 1, 1]} : vector<8x16x6xf32> to vector<1x16x6xf32>
    %26 = vector.shape_cast %25 : vector<1x16x6xf32> to vector<16x6xf32>
    %cst_15 = arith.constant dense<0.000000e+00> : vector<6x6xf32>
    %27 = tpu.matmul %3, %26, %cst_15 {dimension_numbers = #tpu.dot_dimension_numbers<[1], [0], [0], [1], [0, 0, 1, 1], [], []>} : vector<6x16xf32>, vector<16x6xf32>, vector<6x6xf32> -> vector<6x6xf32>
    %28 = vector.extract_strided_slice %6 {offsets = [7, 0, 0], sizes = [1, 16, 6], strides = [1, 1, 1]} : vector<8x16x6xf32> to vector<1x16x6xf32>
    %29 = vector.shape_cast %28 : vector<1x16x6xf32> to vector<16x6xf32>
    %cst_16 = arith.constant dense<0.000000e+00> : vector<6x6xf32>
    %30 = tpu.matmul %3, %29, %cst_16 {dimension_numbers = #tpu.dot_dimension_numbers<[1], [0], [0], [1], [0, 0, 1, 1], [], []>} : vector<6x16xf32>, vector<16x6xf32>, vector<6x6xf32> -> vector<6x6xf32>
    %31 = vector.shape_cast %9 : vector<6x6xf32> to vector<1x6x6xf32>
    %32 = vector.shape_cast %12 : vector<6x6xf32> to vector<1x6x6xf32>
    %33 = vector.shape_cast %15 : vector<6x6xf32> to vector<1x6x6xf32>
    %34 = vector.shape_cast %18 : vector<6x6xf32> to vector<1x6x6xf32>
    %35 = vector.shape_cast %21 : vector<6x6xf32> to vector<1x6x6xf32>
    %36 = vector.shape_cast %24 : vector<6x6xf32> to vector<1x6x6xf32>
    %37 = vector.shape_cast %27 : vector<6x6xf32> to vector<1x6x6xf32>
    %38 = vector.shape_cast %30 : vector<6x6xf32> to vector<1x6x6xf32>
    %39 = tpu.concatenate %31, %32, %33, %34, %35, %36, %37, %38 in 0 : vector<1x6x6xf32>, vector<1x6x6xf32>, vector<1x6x6xf32>, vector<1x6x6xf32>, vector<1x6x6xf32>, vector<1x6x6xf32>, vector<1x6x6xf32>, vector<1x6x6xf32> -> vector<8x6x6xf32>
    %40 = vector.shape_cast %1 : vector<8x16x16xf32> to vector<128x16xf32>
    %cst_17 = arith.constant dense<0.000000e+00> : vector<128x6xf32>
    %41 = tpu.matmul %40, %2, %cst_17 {dimension_numbers = #tpu.dot_dimension_numbers<[1], [0], [0], [1], [0, 0, 1, 1], [], []>} : vector<128x16xf32>, vector<16x6xf32>, vector<128x6xf32> -> vector<128x6xf32>
    %42 = vector.shape_cast %41 : vector<128x6xf32> to vector<8x16x6xf32>
    %43 = vector.extract_strided_slice %42 {offsets = [0, 0, 0], sizes = [1, 16, 6], strides = [1, 1, 1]} : vector<8x16x6xf32> to vector<1x16x6xf32>
    %44 = vector.shape_cast %43 : vector<1x16x6xf32> to vector<16x6xf32>
    %cst_18 = arith.constant dense<0.000000e+00> : vector<6x6xf32>
    %45 = tpu.matmul %3, %44, %cst_18 {dimension_numbers = #tpu.dot_dimension_numbers<[1], [0], [0], [1], [0, 0, 1, 1], [], []>} : vector<6x16xf32>, vector<16x6xf32>, vector<6x6xf32> -> vector<6x6xf32>
    %46 = vector.extract_strided_slice %42 {offsets = [1, 0, 0], sizes = [1, 16, 6], strides = [1, 1, 1]} : vector<8x16x6xf32> to vector<1x16x6xf32>
    %47 = vector.shape_cast %46 : vector<1x16x6xf32> to vector<16x6xf32>
    %cst_19 = arith.constant dense<0.000000e+00> : vector<6x6xf32>
    %48 = tpu.matmul %3, %47, %cst_19 {dimension_numbers = #tpu.dot_dimension_numbers<[1], [0], [0], [1], [0, 0, 1, 1], [], []>} : vector<6x16xf32>, vector<16x6xf32>, vector<6x6xf32> -> vector<6x6xf32>
    %49 = vector.extract_strided_slice %42 {offsets = [2, 0, 0], sizes = [1, 16, 6], strides = [1, 1, 1]} : vector<8x16x6xf32> to vector<1x16x6xf32>
    %50 = vector.shape_cast %49 : vector<1x16x6xf32> to vector<16x6xf32>
    %cst_20 = arith.constant dense<0.000000e+00> : vector<6x6xf32>
    %51 = tpu.matmul %3, %50, %cst_20 {dimension_numbers = #tpu.dot_dimension_numbers<[1], [0], [0], [1], [0, 0, 1, 1], [], []>} : vector<6x16xf32>, vector<16x6xf32>, vector<6x6xf32> -> vector<6x6xf32>
    %52 = vector.extract_strided_slice %42 {offsets = [3, 0, 0], sizes = [1, 16, 6], strides = [1, 1, 1]} : vector<8x16x6xf32> to vector<1x16x6xf32>
    %53 = vector.shape_cast %52 : vector<1x16x6xf32> to vector<16x6xf32>
    %cst_21 = arith.constant dense<0.000000e+00> : vector<6x6xf32>
    %54 = tpu.matmul %3, %53, %cst_21 {dimension_numbers = #tpu.dot_dimension_numbers<[1], [0], [0], [1], [0, 0, 1, 1], [], []>} : vector<6x16xf32>, vector<16x6xf32>, vector<6x6xf32> -> vector<6x6xf32>
    %55 = vector.extract_strided_slice %42 {offsets = [4, 0, 0], sizes = [1, 16, 6], strides = [1, 1, 1]} : vector<8x16x6xf32> to vector<1x16x6xf32>
    %56 = vector.shape_cast %55 : vector<1x16x6xf32> to vector<16x6xf32>
    %cst_22 = arith.constant dense<0.000000e+00> : vector<6x6xf32>
    %57 = tpu.matmul %3, %56, %cst_22 {dimension_numbers = #tpu.dot_dimension_numbers<[1], [0], [0], [1], [0, 0, 1, 1], [], []>} : vector<6x16xf32>, vector<16x6xf32>, vector<6x6xf32> -> vector<6x6xf32>
    %58 = vector.extract_strided_slice %42 {offsets = [5, 0, 0], sizes = [1, 16, 6], strides = [1, 1, 1]} : vector<8x16x6xf32> to vector<1x16x6xf32>
    %59 = vector.shape_cast %58 : vector<1x16x6xf32> to vector<16x6xf32>
    %cst_23 = arith.constant dense<0.000000e+00> : vector<6x6xf32>
    %60 = tpu.matmul %3, %59, %cst_23 {dimension_numbers = #tpu.dot_dimension_numbers<[1], [0], [0], [1], [0, 0, 1, 1], [], []>} : vector<6x16xf32>, vector<16x6xf32>, vector<6x6xf32> -> vector<6x6xf32>
    %61 = vector.extract_strided_slice %42 {offsets = [6, 0, 0], sizes = [1, 16, 6], strides = [1, 1, 1]} : vector<8x16x6xf32> to vector<1x16x6xf32>
    %62 = vector.shape_cast %61 : vector<1x16x6xf32> to vector<16x6xf32>
    %cst_24 = arith.constant dense<0.000000e+00> : vector<6x6xf32>
    %63 = tpu.matmul %3, %62, %cst_24 {dimension_numbers = #tpu.dot_dimension_numbers<[1], [0], [0], [1], [0, 0, 1, 1], [], []>} : vector<6x16xf32>, vector<16x6xf32>, vector<6x6xf32> -> vector<6x6xf32>
    %64 = vector.extract_strided_slice %42 {offsets = [7, 0, 0], sizes = [1, 16, 6], strides = [1, 1, 1]} : vector<8x16x6xf32> to vector<1x16x6xf32>
    %65 = vector.shape_cast %64 : vector<1x16x6xf32> to vector<16x6xf32>
    %cst_25 = arith.constant dense<0.000000e+00> : vector<6x6xf32>
    %66 = tpu.matmul %3, %65, %cst_25 {dimension_numbers = #tpu.dot_dimension_numbers<[1], [0], [0], [1], [0, 0, 1, 1], [], []>} : vector<6x16xf32>, vector<16x6xf32>, vector<6x6xf32> -> vector<6x6xf32>
    %67 = vector.shape_cast %45 : vector<6x6xf32> to vector<1x6x6xf32>
    %68 = vector.shape_cast %48 : vector<6x6xf32> to vector<1x6x6xf32>
    %69 = vector.shape_cast %51 : vector<6x6xf32> to vector<1x6x6xf32>
    %70 = vector.shape_cast %54 : vector<6x6xf32> to vector<1x6x6xf32>
    %71 = vector.shape_cast %57 : vector<6x6xf32> to vector<1x6x6xf32>
    %72 = vector.shape_cast %60 : vector<6x6xf32> to vector<1x6x6xf32>
    %73 = vector.shape_cast %63 : vector<6x6xf32> to vector<1x6x6xf32>
    %74 = vector.shape_cast %66 : vector<6x6xf32> to vector<1x6x6xf32>
    %75 = tpu.concatenate %67, %68, %69, %70, %71, %72, %73, %74 in 0 : vector<1x6x6xf32>, vector<1x6x6xf32>, vector<1x6x6xf32>, vector<1x6x6xf32>, vector<1x6x6xf32>, vector<1x6x6xf32>, vector<1x6x6xf32>, vector<1x6x6xf32> -> vector<8x6x6xf32>
    %76 = arith.mulf %0, %0 : vector<8x16x16xf32>
    %77 = vector.shape_cast %76 : vector<8x16x16xf32> to vector<128x16xf32>
    %cst_26 = arith.constant dense<0.000000e+00> : vector<128x6xf32>
    %78 = tpu.matmul %77, %2, %cst_26 {dimension_numbers = #tpu.dot_dimension_numbers<[1], [0], [0], [1], [0, 0, 1, 1], [], []>} : vector<128x16xf32>, vector<16x6xf32>, vector<128x6xf32> -> vector<128x6xf32>
    %79 = vector.shape_cast %78 : vector<128x6xf32> to vector<8x16x6xf32>
    %80 = vector.extract_strided_slice %79 {offsets = [0, 0, 0], sizes = [1, 16, 6], strides = [1, 1, 1]} : vector<8x16x6xf32> to vector<1x16x6xf32>
    %81 = vector.shape_cast %80 : vector<1x16x6xf32> to vector<16x6xf32>
    %cst_27 = arith.constant dense<0.000000e+00> : vector<6x6xf32>
    %82 = tpu.matmul %3, %81, %cst_27 {dimension_numbers = #tpu.dot_dimension_numbers<[1], [0], [0], [1], [0, 0, 1, 1], [], []>} : vector<6x16xf32>, vector<16x6xf32>, vector<6x6xf32> -> vector<6x6xf32>
    %83 = vector.extract_strided_slice %79 {offsets = [1, 0, 0], sizes = [1, 16, 6], strides = [1, 1, 1]} : vector<8x16x6xf32> to vector<1x16x6xf32>
    %84 = vector.shape_cast %83 : vector<1x16x6xf32> to vector<16x6xf32>
    %cst_28 = arith.constant dense<0.000000e+00> : vector<6x6xf32>
    %85 = tpu.matmul %3, %84, %cst_28 {dimension_numbers = #tpu.dot_dimension_numbers<[1], [0], [0], [1], [0, 0, 1, 1], [], []>} : vector<6x16xf32>, vector<16x6xf32>, vector<6x6xf32> -> vector<6x6xf32>
    %86 = vector.extract_strided_slice %79 {offsets = [2, 0, 0], sizes = [1, 16, 6], strides = [1, 1, 1]} : vector<8x16x6xf32> to vector<1x16x6xf32>
    %87 = vector.shape_cast %86 : vector<1x16x6xf32> to vector<16x6xf32>
    %cst_29 = arith.constant dense<0.000000e+00> : vector<6x6xf32>
    %88 = tpu.matmul %3, %87, %cst_29 {dimension_numbers = #tpu.dot_dimension_numbers<[1], [0], [0], [1], [0, 0, 1, 1], [], []>} : vector<6x16xf32>, vector<16x6xf32>, vector<6x6xf32> -> vector<6x6xf32>
    %89 = vector.extract_strided_slice %79 {offsets = [3, 0, 0], sizes = [1, 16, 6], strides = [1, 1, 1]} : vector<8x16x6xf32> to vector<1x16x6xf32>
    %90 = vector.shape_cast %89 : vector<1x16x6xf32> to vector<16x6xf32>
    %cst_30 = arith.constant dense<0.000000e+00> : vector<6x6xf32>
    %91 = tpu.matmul %3, %90, %cst_30 {dimension_numbers = #tpu.dot_dimension_numbers<[1], [0], [0], [1], [0, 0, 1, 1], [], []>} : vector<6x16xf32>, vector<16x6xf32>, vector<6x6xf32> -> vector<6x6xf32>
    %92 = vector.extract_strided_slice %79 {offsets = [4, 0, 0], sizes = [1, 16, 6], strides = [1, 1, 1]} : vector<8x16x6xf32> to vector<1x16x6xf32>
    %93 = vector.shape_cast %92 : vector<1x16x6xf32> to vector<16x6xf32>
    %cst_31 = arith.constant dense<0.000000e+00> : vector<6x6xf32>
    %94 = tpu.matmul %3, %93, %cst_31 {dimension_numbers = #tpu.dot_dimension_numbers<[1], [0], [0], [1], [0, 0, 1, 1], [], []>} : vector<6x16xf32>, vector<16x6xf32>, vector<6x6xf32> -> vector<6x6xf32>
    %95 = vector.extract_strided_slice %79 {offsets = [5, 0, 0], sizes = [1, 16, 6], strides = [1, 1, 1]} : vector<8x16x6xf32> to vector<1x16x6xf32>
    %96 = vector.shape_cast %95 : vector<1x16x6xf32> to vector<16x6xf32>
    %cst_32 = arith.constant dense<0.000000e+00> : vector<6x6xf32>
    %97 = tpu.matmul %3, %96, %cst_32 {dimension_numbers = #tpu.dot_dimension_numbers<[1], [0], [0], [1], [0, 0, 1, 1], [], []>} : vector<6x16xf32>, vector<16x6xf32>, vector<6x6xf32> -> vector<6x6xf32>
    %98 = vector.extract_strided_slice %79 {offsets = [6, 0, 0], sizes = [1, 16, 6], strides = [1, 1, 1]} : vector<8x16x6xf32> to vector<1x16x6xf32>
    %99 = vector.shape_cast %98 : vector<1x16x6xf32> to vector<16x6xf32>
    %cst_33 = arith.constant dense<0.000000e+00> : vector<6x6xf32>
    %100 = tpu.matmul %3, %99, %cst_33 {dimension_numbers = #tpu.dot_dimension_numbers<[1], [0], [0], [1], [0, 0, 1, 1], [], []>} : vector<6x16xf32>, vector<16x6xf32>, vector<6x6xf32> -> vector<6x6xf32>
    %101 = vector.extract_strided_slice %79 {offsets = [7, 0, 0], sizes = [1, 16, 6], strides = [1, 1, 1]} : vector<8x16x6xf32> to vector<1x16x6xf32>
    %102 = vector.shape_cast %101 : vector<1x16x6xf32> to vector<16x6xf32>
    %cst_34 = arith.constant dense<0.000000e+00> : vector<6x6xf32>
    %103 = tpu.matmul %3, %102, %cst_34 {dimension_numbers = #tpu.dot_dimension_numbers<[1], [0], [0], [1], [0, 0, 1, 1], [], []>} : vector<6x16xf32>, vector<16x6xf32>, vector<6x6xf32> -> vector<6x6xf32>
    %104 = vector.shape_cast %82 : vector<6x6xf32> to vector<1x6x6xf32>
    %105 = vector.shape_cast %85 : vector<6x6xf32> to vector<1x6x6xf32>
    %106 = vector.shape_cast %88 : vector<6x6xf32> to vector<1x6x6xf32>
    %107 = vector.shape_cast %91 : vector<6x6xf32> to vector<1x6x6xf32>
    %108 = vector.shape_cast %94 : vector<6x6xf32> to vector<1x6x6xf32>
    %109 = vector.shape_cast %97 : vector<6x6xf32> to vector<1x6x6xf32>
    %110 = vector.shape_cast %100 : vector<6x6xf32> to vector<1x6x6xf32>
    %111 = vector.shape_cast %103 : vector<6x6xf32> to vector<1x6x6xf32>
    %112 = tpu.concatenate %104, %105, %106, %107, %108, %109, %110, %111 in 0 : vector<1x6x6xf32>, vector<1x6x6xf32>, vector<1x6x6xf32>, vector<1x6x6xf32>, vector<1x6x6xf32>, vector<1x6x6xf32>, vector<1x6x6xf32>, vector<1x6x6xf32> -> vector<8x6x6xf32>
    %113 = arith.mulf %1, %1 : vector<8x16x16xf32>
    %114 = vector.shape_cast %113 : vector<8x16x16xf32> to vector<128x16xf32>
    %cst_35 = arith.constant dense<0.000000e+00> : vector<128x6xf32>
    %115 = tpu.matmul %114, %2, %cst_35 {dimension_numbers = #tpu.dot_dimension_numbers<[1], [0], [0], [1], [0, 0, 1, 1], [], []>} : vector<128x16xf32>, vector<16x6xf32>, vector<128x6xf32> -> vector<128x6xf32>
    %116 = vector.shape_cast %115 : vector<128x6xf32> to vector<8x16x6xf32>
    %117 = vector.extract_strided_slice %116 {offsets = [0, 0, 0], sizes = [1, 16, 6], strides = [1, 1, 1]} : vector<8x16x6xf32> to vector<1x16x6xf32>
    %118 = vector.shape_cast %117 : vector<1x16x6xf32> to vector<16x6xf32>
    %cst_36 = arith.constant dense<0.000000e+00> : vector<6x6xf32>
    %119 = tpu.matmul %3, %118, %cst_36 {dimension_numbers = #tpu.dot_dimension_numbers<[1], [0], [0], [1], [0, 0, 1, 1], [], []>} : vector<6x16xf32>, vector<16x6xf32>, vector<6x6xf32> -> vector<6x6xf32>
    %120 = vector.extract_strided_slice %116 {offsets = [1, 0, 0], sizes = [1, 16, 6], strides = [1, 1, 1]} : vector<8x16x6xf32> to vector<1x16x6xf32>
    %121 = vector.shape_cast %120 : vector<1x16x6xf32> to vector<16x6xf32>
    %cst_37 = arith.constant dense<0.000000e+00> : vector<6x6xf32>
    %122 = tpu.matmul %3, %121, %cst_37 {dimension_numbers = #tpu.dot_dimension_numbers<[1], [0], [0], [1], [0, 0, 1, 1], [], []>} : vector<6x16xf32>, vector<16x6xf32>, vector<6x6xf32> -> vector<6x6xf32>
    %123 = vector.extract_strided_slice %116 {offsets = [2, 0, 0], sizes = [1, 16, 6], strides = [1, 1, 1]} : vector<8x16x6xf32> to vector<1x16x6xf32>
    %124 = vector.shape_cast %123 : vector<1x16x6xf32> to vector<16x6xf32>
    %cst_38 = arith.constant dense<0.000000e+00> : vector<6x6xf32>
    %125 = tpu.matmul %3, %124, %cst_38 {dimension_numbers = #tpu.dot_dimension_numbers<[1], [0], [0], [1], [0, 0, 1, 1], [], []>} : vector<6x16xf32>, vector<16x6xf32>, vector<6x6xf32> -> vector<6x6xf32>
    %126 = vector.extract_strided_slice %116 {offsets = [3, 0, 0], sizes = [1, 16, 6], strides = [1, 1, 1]} : vector<8x16x6xf32> to vector<1x16x6xf32>
    %127 = vector.shape_cast %126 : vector<1x16x6xf32> to vector<16x6xf32>
    %cst_39 = arith.constant dense<0.000000e+00> : vector<6x6xf32>
    %128 = tpu.matmul %3, %127, %cst_39 {dimension_numbers = #tpu.dot_dimension_numbers<[1], [0], [0], [1], [0, 0, 1, 1], [], []>} : vector<6x16xf32>, vector<16x6xf32>, vector<6x6xf32> -> vector<6x6xf32>
    %129 = vector.extract_strided_slice %116 {offsets = [4, 0, 0], sizes = [1, 16, 6], strides = [1, 1, 1]} : vector<8x16x6xf32> to vector<1x16x6xf32>
    %130 = vector.shape_cast %129 : vector<1x16x6xf32> to vector<16x6xf32>
    %cst_40 = arith.constant dense<0.000000e+00> : vector<6x6xf32>
    %131 = tpu.matmul %3, %130, %cst_40 {dimension_numbers = #tpu.dot_dimension_numbers<[1], [0], [0], [1], [0, 0, 1, 1], [], []>} : vector<6x16xf32>, vector<16x6xf32>, vector<6x6xf32> -> vector<6x6xf32>
    %132 = vector.extract_strided_slice %116 {offsets = [5, 0, 0], sizes = [1, 16, 6], strides = [1, 1, 1]} : vector<8x16x6xf32> to vector<1x16x6xf32>
    %133 = vector.shape_cast %132 : vector<1x16x6xf32> to vector<16x6xf32>
    %cst_41 = arith.constant dense<0.000000e+00> : vector<6x6xf32>
    %134 = tpu.matmul %3, %133, %cst_41 {dimension_numbers = #tpu.dot_dimension_numbers<[1], [0], [0], [1], [0, 0, 1, 1], [], []>} : vector<6x16xf32>, vector<16x6xf32>, vector<6x6xf32> -> vector<6x6xf32>
    %135 = vector.extract_strided_slice %116 {offsets = [6, 0, 0], sizes = [1, 16, 6], strides = [1, 1, 1]} : vector<8x16x6xf32> to vector<1x16x6xf32>
    %136 = vector.shape_cast %135 : vector<1x16x6xf32> to vector<16x6xf32>
    %cst_42 = arith.constant dense<0.000000e+00> : vector<6x6xf32>
    %137 = tpu.matmul %3, %136, %cst_42 {dimension_numbers = #tpu.dot_dimension_numbers<[1], [0], [0], [1], [0, 0, 1, 1], [], []>} : vector<6x16xf32>, vector<16x6xf32>, vector<6x6xf32> -> vector<6x6xf32>
    %138 = vector.extract_strided_slice %116 {offsets = [7, 0, 0], sizes = [1, 16, 6], strides = [1, 1, 1]} : vector<8x16x6xf32> to vector<1x16x6xf32>
    %139 = vector.shape_cast %138 : vector<1x16x6xf32> to vector<16x6xf32>
    %cst_43 = arith.constant dense<0.000000e+00> : vector<6x6xf32>
    %140 = tpu.matmul %3, %139, %cst_43 {dimension_numbers = #tpu.dot_dimension_numbers<[1], [0], [0], [1], [0, 0, 1, 1], [], []>} : vector<6x16xf32>, vector<16x6xf32>, vector<6x6xf32> -> vector<6x6xf32>
    %141 = vector.shape_cast %119 : vector<6x6xf32> to vector<1x6x6xf32>
    %142 = vector.shape_cast %122 : vector<6x6xf32> to vector<1x6x6xf32>
    %143 = vector.shape_cast %125 : vector<6x6xf32> to vector<1x6x6xf32>
    %144 = vector.shape_cast %128 : vector<6x6xf32> to vector<1x6x6xf32>
    %145 = vector.shape_cast %131 : vector<6x6xf32> to vector<1x6x6xf32>
    %146 = vector.shape_cast %134 : vector<6x6xf32> to vector<1x6x6xf32>
    %147 = vector.shape_cast %137 : vector<6x6xf32> to vector<1x6x6xf32>
    %148 = vector.shape_cast %140 : vector<6x6xf32> to vector<1x6x6xf32>
    %149 = tpu.concatenate %141, %142, %143, %144, %145, %146, %147, %148 in 0 : vector<1x6x6xf32>, vector<1x6x6xf32>, vector<1x6x6xf32>, vector<1x6x6xf32>, vector<1x6x6xf32>, vector<1x6x6xf32>, vector<1x6x6xf32>, vector<1x6x6xf32> -> vector<8x6x6xf32>
    %150 = arith.mulf %0, %1 : vector<8x16x16xf32>
    %151 = vector.shape_cast %150 : vector<8x16x16xf32> to vector<128x16xf32>
    %cst_44 = arith.constant dense<0.000000e+00> : vector<128x6xf32>
    %152 = tpu.matmul %151, %2, %cst_44 {dimension_numbers = #tpu.dot_dimension_numbers<[1], [0], [0], [1], [0, 0, 1, 1], [], []>} : vector<128x16xf32>, vector<16x6xf32>, vector<128x6xf32> -> vector<128x6xf32>
    %153 = vector.shape_cast %152 : vector<128x6xf32> to vector<8x16x6xf32>
    %154 = vector.extract_strided_slice %153 {offsets = [0, 0, 0], sizes = [1, 16, 6], strides = [1, 1, 1]} : vector<8x16x6xf32> to vector<1x16x6xf32>
    %155 = vector.shape_cast %154 : vector<1x16x6xf32> to vector<16x6xf32>
    %cst_45 = arith.constant dense<0.000000e+00> : vector<6x6xf32>
    %156 = tpu.matmul %3, %155, %cst_45 {dimension_numbers = #tpu.dot_dimension_numbers<[1], [0], [0], [1], [0, 0, 1, 1], [], []>} : vector<6x16xf32>, vector<16x6xf32>, vector<6x6xf32> -> vector<6x6xf32>
    %157 = vector.extract_strided_slice %153 {offsets = [1, 0, 0], sizes = [1, 16, 6], strides = [1, 1, 1]} : vector<8x16x6xf32> to vector<1x16x6xf32>
    %158 = vector.shape_cast %157 : vector<1x16x6xf32> to vector<16x6xf32>
    %cst_46 = arith.constant dense<0.000000e+00> : vector<6x6xf32>
    %159 = tpu.matmul %3, %158, %cst_46 {dimension_numbers = #tpu.dot_dimension_numbers<[1], [0], [0], [1], [0, 0, 1, 1], [], []>} : vector<6x16xf32>, vector<16x6xf32>, vector<6x6xf32> -> vector<6x6xf32>
    %160 = vector.extract_strided_slice %153 {offsets = [2, 0, 0], sizes = [1, 16, 6], strides = [1, 1, 1]} : vector<8x16x6xf32> to vector<1x16x6xf32>
    %161 = vector.shape_cast %160 : vector<1x16x6xf32> to vector<16x6xf32>
    %cst_47 = arith.constant dense<0.000000e+00> : vector<6x6xf32>
    %162 = tpu.matmul %3, %161, %cst_47 {dimension_numbers = #tpu.dot_dimension_numbers<[1], [0], [0], [1], [0, 0, 1, 1], [], []>} : vector<6x16xf32>, vector<16x6xf32>, vector<6x6xf32> -> vector<6x6xf32>
    %163 = vector.extract_strided_slice %153 {offsets = [3, 0, 0], sizes = [1, 16, 6], strides = [1, 1, 1]} : vector<8x16x6xf32> to vector<1x16x6xf32>
    %164 = vector.shape_cast %163 : vector<1x16x6xf32> to vector<16x6xf32>
    %cst_48 = arith.constant dense<0.000000e+00> : vector<6x6xf32>
    %165 = tpu.matmul %3, %164, %cst_48 {dimension_numbers = #tpu.dot_dimension_numbers<[1], [0], [0], [1], [0, 0, 1, 1], [], []>} : vector<6x16xf32>, vector<16x6xf32>, vector<6x6xf32> -> vector<6x6xf32>
    %166 = vector.extract_strided_slice %153 {offsets = [4, 0, 0], sizes = [1, 16, 6], strides = [1, 1, 1]} : vector<8x16x6xf32> to vector<1x16x6xf32>
    %167 = vector.shape_cast %166 : vector<1x16x6xf32> to vector<16x6xf32>
    %cst_49 = arith.constant dense<0.000000e+00> : vector<6x6xf32>
    %168 = tpu.matmul %3, %167, %cst_49 {dimension_numbers = #tpu.dot_dimension_numbers<[1], [0], [0], [1], [0, 0, 1, 1], [], []>} : vector<6x16xf32>, vector<16x6xf32>, vector<6x6xf32> -> vector<6x6xf32>
    %169 = vector.extract_strided_slice %153 {offsets = [5, 0, 0], sizes = [1, 16, 6], strides = [1, 1, 1]} : vector<8x16x6xf32> to vector<1x16x6xf32>
    %170 = vector.shape_cast %169 : vector<1x16x6xf32> to vector<16x6xf32>
    %cst_50 = arith.constant dense<0.000000e+00> : vector<6x6xf32>
    %171 = tpu.matmul %3, %170, %cst_50 {dimension_numbers = #tpu.dot_dimension_numbers<[1], [0], [0], [1], [0, 0, 1, 1], [], []>} : vector<6x16xf32>, vector<16x6xf32>, vector<6x6xf32> -> vector<6x6xf32>
    %172 = vector.extract_strided_slice %153 {offsets = [6, 0, 0], sizes = [1, 16, 6], strides = [1, 1, 1]} : vector<8x16x6xf32> to vector<1x16x6xf32>
    %173 = vector.shape_cast %172 : vector<1x16x6xf32> to vector<16x6xf32>
    %cst_51 = arith.constant dense<0.000000e+00> : vector<6x6xf32>
    %174 = tpu.matmul %3, %173, %cst_51 {dimension_numbers = #tpu.dot_dimension_numbers<[1], [0], [0], [1], [0, 0, 1, 1], [], []>} : vector<6x16xf32>, vector<16x6xf32>, vector<6x6xf32> -> vector<6x6xf32>
    %175 = vector.extract_strided_slice %153 {offsets = [7, 0, 0], sizes = [1, 16, 6], strides = [1, 1, 1]} : vector<8x16x6xf32> to vector<1x16x6xf32>
    %176 = vector.shape_cast %175 : vector<1x16x6xf32> to vector<16x6xf32>
    %cst_52 = arith.constant dense<0.000000e+00> : vector<6x6xf32>
    %177 = tpu.matmul %3, %176, %cst_52 {dimension_numbers = #tpu.dot_dimension_numbers<[1], [0], [0], [1], [0, 0, 1, 1], [], []>} : vector<6x16xf32>, vector<16x6xf32>, vector<6x6xf32> -> vector<6x6xf32>
    %178 = vector.shape_cast %156 : vector<6x6xf32> to vector<1x6x6xf32>
    %179 = vector.shape_cast %159 : vector<6x6xf32> to vector<1x6x6xf32>
    %180 = vector.shape_cast %162 : vector<6x6xf32> to vector<1x6x6xf32>
    %181 = vector.shape_cast %165 : vector<6x6xf32> to vector<1x6x6xf32>
    %182 = vector.shape_cast %168 : vector<6x6xf32> to vector<1x6x6xf32>
    %183 = vector.shape_cast %171 : vector<6x6xf32> to vector<1x6x6xf32>
    %184 = vector.shape_cast %174 : vector<6x6xf32> to vector<1x6x6xf32>
    %185 = vector.shape_cast %177 : vector<6x6xf32> to vector<1x6x6xf32>
    %186 = tpu.concatenate %178, %179, %180, %181, %182, %183, %184, %185 in 0 : vector<1x6x6xf32>, vector<1x6x6xf32>, vector<1x6x6xf32>, vector<1x6x6xf32>, vector<1x6x6xf32>, vector<1x6x6xf32>, vector<1x6x6xf32>, vector<1x6x6xf32> -> vector<8x6x6xf32>
    %187 = arith.mulf %39, %39 : vector<8x6x6xf32>
    %188 = arith.mulf %75, %75 : vector<8x6x6xf32>
    %189 = arith.mulf %39, %75 : vector<8x6x6xf32>
    %190 = arith.subf %112, %187 : vector<8x6x6xf32>
    %191 = arith.subf %149, %188 : vector<8x6x6xf32>
    %192 = arith.subf %186, %189 : vector<8x6x6xf32>
    %cst_53 = arith.constant 2.000000e+00 : f32
    %193 = vector.broadcast %cst_53 : f32 to vector<8x6x6xf32>
    %194 = arith.mulf %193, %192 : vector<8x6x6xf32>
    %cst_54 = arith.constant 8.99999984E-4 : f32
    %195 = vector.broadcast %cst_54 : f32 to vector<8x6x6xf32>
    %196 = arith.addf %194, %195 : vector<8x6x6xf32>
    %197 = arith.addf %190, %191 : vector<8x6x6xf32>
    %cst_55 = arith.constant 8.99999984E-4 : f32
    %198 = vector.broadcast %cst_55 : f32 to vector<8x6x6xf32>
    %199 = arith.addf %197, %198 : vector<8x6x6xf32>
    %200 = tpu.reciprocal %199 {approx = true} : vector<8x6x6xf32> -> vector<8x6x6xf32>
    %201 = arith.mulf %199, %200 : vector<8x6x6xf32>
    %cst_56 = arith.constant 2.000000e+00 : f32
    %202 = vector.broadcast %cst_56 : f32 to vector<8x6x6xf32>
    %203 = arith.subf %202, %201 : vector<8x6x6xf32>
    %204 = arith.mulf %200, %203 : vector<8x6x6xf32>
    %205 = arith.mulf %196, %204 : vector<8x6x6xf32>
    %cst_57 = arith.constant 0.000000e+00 : f32
    %206 = vector.broadcast %cst_57 : f32 to vector<8x6x6xf32>
    %207 = arith.maximumf %205, %206 : vector<8x6x6xf32>
    %cst_58 = arith.constant 2.000000e+00 : f32
    %208 = vector.broadcast %cst_58 : f32 to vector<8x6x6xf32>
    %209 = arith.mulf %208, %189 : vector<8x6x6xf32>
    %cst_59 = arith.constant 9.99999974E-5 : f32
    %210 = vector.broadcast %cst_59 : f32 to vector<8x6x6xf32>
    %211 = arith.addf %209, %210 : vector<8x6x6xf32>
    %212 = arith.addf %187, %188 : vector<8x6x6xf32>
    %cst_60 = arith.constant 9.99999974E-5 : f32
    %213 = vector.broadcast %cst_60 : f32 to vector<8x6x6xf32>
    %214 = arith.addf %212, %213 : vector<8x6x6xf32>
    %215 = tpu.reciprocal %214 {approx = true} : vector<8x6x6xf32> -> vector<8x6x6xf32>
    %216 = arith.mulf %214, %215 : vector<8x6x6xf32>
    %cst_61 = arith.constant 2.000000e+00 : f32
    %217 = vector.broadcast %cst_61 : f32 to vector<8x6x6xf32>
    %218 = arith.subf %217, %216 : vector<8x6x6xf32>
    %219 = arith.mulf %215, %218 : vector<8x6x6xf32>
    %220 = arith.mulf %211, %219 : vector<8x6x6xf32>
    %221 = arith.mulf %220, %207 : vector<8x6x6xf32>
    %cst_62 = arith.constant dense<0.000000e+00> : vector<8x6xf32>
    %222 = vector.multi_reduction <add>, %221, %cst_62 [2] : vector<8x6x6xf32> to vector<8x6xf32>
    %cst_63 = arith.constant dense<0.000000e+00> : vector<8xf32>
    %223 = vector.multi_reduction <add>, %222, %cst_63 [1] : vector<8x6xf32> to vector<8xf32>
    %224 = vector.shape_cast %223 : vector<8xf32> to vector<8x1xf32>
    %225 = tpu.transpose %224, [1, 0] : vector<8x1xf32> -> vector<1x8xf32>
    %cst_64 = arith.constant 0.027777778 : f32
    %226 = vector.broadcast %cst_64 : f32 to vector<1x8xf32>
    %227 = arith.mulf %225, %226 : vector<1x8xf32>
    %c0_65 = arith.constant 0 : index
    %c0_66 = arith.constant 0 : index
    %c0_67 = arith.constant 0 : index
    %228 = vector.load %arg5[%c0_65, %c0_66, %c0_67] : memref<1x1x8xf32, #tpu.memory_space<vmem>>, vector<1x1x8xf32>
    %229 = vector.shape_cast %228 : vector<1x1x8xf32> to vector<1x8xf32>
    %230 = vector.shape_cast %227 : vector<1x8xf32> to vector<1x1x8xf32>
    tpu.vector_store %arg5[%c0_65, %c0_66, %c0_67], %230 {strides = array<i32>} : memref<1x1x8xf32, #tpu.memory_space<vmem>>, vector<1x1x8xf32>,
    return
  }
  func.func @transform_0(%arg0: i32) -> (i32, i32) {
    %c0_i32 = arith.constant 0 : i32
    %c0_i32_0 = arith.constant 0 : i32
    %c0_i32_1 = arith.constant 0 : i32
    return %c0_i32, %c0_i32_0 : i32, i32
  }
  func.func @transform_1(%arg0: i32) -> (i32, i32) {
    %c0_i32 = arith.constant 0 : i32
    %c0_i32_0 = arith.constant 0 : i32
    %c0_i32_1 = arith.constant 0 : i32
    return %c0_i32, %c0_i32_0 : i32, i32
  }
  func.func @transform_2(%arg0: i32) -> (i32, i32, i32) {
    %c0_i32 = arith.constant 0 : i32
    %c0_i32_0 = arith.constant 0 : i32
    %c0_i32_1 = arith.constant 0 : i32
    return %arg0, %c0_i32, %c0_i32_0 : i32, i32, i32
  }
  func.func @transform_3(%arg0: i32) -> (i32, i32, i32) {
    %c0_i32 = arith.constant 0 : i32
    %c0_i32_0 = arith.constant 0 : i32
    %c0_i32_1 = arith.constant 0 : i32
    return %arg0, %c0_i32, %c0_i32_0 : i32, i32, i32
  }
  func.func @transform_4(%arg0: i32) -> (i32, i32, i32) {
    %c0_i32 = arith.constant 0 : i32
    %c0_i32_0 = arith.constant 0 : i32
    %c0_i32_1 = arith.constant 0 : i32
    return %arg0, %c0_i32, %c0_i32_0 : i32, i32, i32
  }
}

</mosaic_0001>

<bundles_post_ra>
// kernel: tpu_custom_call.1
= control target key start
LH: loop header
LB: loop body
LE: loop exit
PB: predicated region body
PF: predicated region fallthrough
CT: control target
= control target key end

     0   :  { %9 = vsyncpa [#allocation3], 0  ;;  %s5995_s0 = inlined_call_operand.vmem [shape: f32[16,6], index: 0, kind: input, shape index: {}]   ;;  %s5996_s1 = inlined_call_operand.vmem [shape: f32[6,16], index: 1, kind: input, shape index: {}]   ;;  %s5997_s2 = inlined_call_operand.hbm [shape: f32[8,16,16], index: 2, kind: input, shape index: {}]   ;;  %s5998_s3 = inlined_call_operand.hbm [shape: f32[8,16,16], index: 3, kind: input, shape index: {}]   ;;  %s5999_s4 = inlined_call_operand.hbm [shape: f32[1,1,8], index: 4, kind: output, shape index: {}]  }
   0x1   :  { %10 = vsyncpa [#allocation6], 0 }
   0x2   :  { %11 = vsyncpa [#allocation4], 0  ;;  %s5245_s15 = smov [#allocation2]   ;;  %s5173_s19 = scalar_lea.hbm %s5997_s2, 2048 }
   0x3   :  { %s21_s16 = sshll.u32 %s5245_s15, 4  ;;  %p5174_p0 = scmp.ne.s32.totalorder %s5997_s2, %s5173_s19  ;;  %s22_s16 = int_to_ptr.vmem [resolvable:$true] %s21_s16 }
   0x4   :  { %p5177_p1 = scmp.lt.u32.totalorder %s5173_s19, %s5997_s2 }
   0x6   :  { %p5179_p2 = pnand %p5177_p1, %p5174_p0 }
   0x8   :  { %5182 = shalt.err (!%p5179_p2)
}
   0x9   :  { %s5183_s24 = scalar_lea.vmem %s22_s16, 2048  ;;  %p5188_p4 = scmp.lt.s32.totalorder %s22_s16, %s22_s16 }
   0xa   :  { %p5184_p3 = scmp.ne.s32.totalorder %s22_s16, %s5183_s24  ;;  %p5189_p5 = scmp.lt.s32.totalorder %s5183_s24, %s5183_s24 }
   0xc   :  { %p5190_p6 = por %p5189_p5, %p5188_p4 }
   0xe   :  { %p5191_p7 = pnand %p5190_p6, %p5184_p3 }
  0x10   :  { %5194 = shalt.err (!%p5191_p7)
}
  0x11   :  { %s5246_s25 = smov 128   ;;  %s5247_s26 = smov 8  }
  0x12   :  { %27 = dma.hbm_to_vmem [thread:$0]  %s5997_s2, 2048, %s22_s16, [#allocation3], %s5246_s25, %s5246_s25, %s5247_s26  }
  0x13   :  { %s5248_s29 = smov [#allocation5]   ;;  %s5195_s7 = scalar_lea.hbm %s5998_s3, 2048 }
  0x14   :  { %s33_s30 = sshll.u32 %s5248_s29, 4  ;;  %p5196_p8 = scmp.ne.s32.totalorder %s5998_s3, %s5195_s7  ;;  %s34_s30 = int_to_ptr.vmem [resolvable:$true] %s33_s30 }
  0x15   :  { %p5199_p9 = scmp.lt.u32.totalorder %s5195_s7, %s5998_s3 }
  0x17   :  { %p5201_p10 = pnand %p5199_p9, %p5196_p8 }
  0x19   :  { %5204 = shalt.err (!%p5201_p10)
}
  0x1a   :  { %s5205_s12 = scalar_lea.vmem %s34_s30, 2048  ;;  %p5210_p12 = scmp.lt.s32.totalorder %s34_s30, %s34_s30 }
  0x1b   :  { %p5206_p11 = scmp.ne.s32.totalorder %s34_s30, %s5205_s12  ;;  %p5211_p13 = scmp.lt.s32.totalorder %s5205_s12, %s5205_s12 }
  0x1d   :  { %p5212_p0 = por %p5211_p13, %p5210_p12 }
  0x1f   :  { %p5213_p1 = pnand %p5212_p0, %p5206_p11 }
  0x21   :  { %5216 = shalt.err (!%p5213_p1)
}
  0x22   :  { %39 = dma.hbm_to_vmem [thread:$0]  %s5998_s3, 2048, %s34_s30, [#allocation6], %s5246_s25, %s5246_s25, %s5247_s26  }
  0x23   :  { %5239 = dma.done.wait [#allocation3], 2048  }
  0x24   :  { %5240 = vsyncadd [#allocation3], 4294965248 }
  0x25   :  { %5241 = dma.done.wait [#allocation6], 2048  }
  0x26   :  { %5242 = vsyncadd [#allocation6], 4294965248  ;;  %vm81_vm0 = vcmask 130048   ;;  %v78_v0 = vld [vmem:[%s5995_s0] sm:$0xff]  ;;  %v79_v1 = vld [vmem:[%s5995_s0 + $0x8] sm:$0xff]  ;;  %vm5250_vm1 = vmmov 0  }
  0x27   :  { %v5308_v2 = vld [vmem:[#allocation2] sm:$0xff]  ;;  %v5310_v3 = vpack.c.bf16 %v79_v1, %v78_v0  ;;  %v5314_v4 = vld [vmem:[#allocation2 + $0x8] sm:$0xff]  ;;  %v5325_v7 = vld [vmem:[#allocation2 + $0x10] sm:$0xff]  ;;  %vm4106_vm2 = vcmask 46080   ;;  %vm4173_vm3 = vcmask 1041409   ;;  %vm4175_vm4 = vcmask 1042434  }
  0x28   :  { %4577 = vmatprep.mubr.msk.f32.mxu0 %vm81_vm0, %v5308_v2  ;;  %v5316_v5 = vld [vmem:[#allocation5 + $0x8] sm:$0xff]  ;;  %v5327_v8 = vld [vmem:[#allocation2 + $0x18] sm:$0xff]  ;;  %v5329_v9 = vld [vmem:[#allocation2 + $0x20] sm:$0xff]  ;;  %v1591_v51 = vmul.f32 %v5308_v2, %v5308_v2  ;;  %v1592_v52 = vmul.f32 %v5314_v4, %v5314_v4  ;;  %v1593_v53 = vmul.f32 %v5325_v7, %v5325_v7  ;;  %vm4177_vm5 = vcmask 1043459  }
  0x29   :  { %v5320_v6 = vmul.f32 %v5316_v5, %v5314_v4  ;;  %4994 = vmatprep.subr.bf16.mxu0 %v5310_v3  ;;  %v5331_v10 = vld [vmem:[#allocation2 + $0x28] sm:$0xff]  ;;  %v5333_v11 = vld [vmem:[#allocation5] sm:$0xff]  ;;  %v5337_v12 = vld [vmem:[#allocation2 + $0x30] sm:$0xff]  ;;  %v1594_v54 = vmul.f32 %v5327_v8, %v5327_v8  ;;  %v1595_v55 = vmul.f32 %v5329_v9, %v5329_v9  ;;  %vm4179_vm6 = vcmask 1044484  }
  0x2a   :  { %4996 = vmatpush3.bf16.msra.mxu0 %v5310_v3  ;;  %v5339_v13 = vld [vmem:[#allocation2 + $0x38] sm:$0xff]  ;;  %v5343_v14 = vmul.f32 %v5333_v11, %v5308_v2  ;;  %v5345_v15 = vld [vmem:[#allocation5 + $0x10] sm:$0xff]  ;;  %v5352_v17 = vld [vmem:[#allocation2 + $0x40] sm:$0xff]  ;;  %v1596_v56 = vmul.f32 %v5331_v10, %v5331_v10  ;;  %v1597_v57 = vmul.f32 %v5337_v12, %v5337_v12  ;;  %v5249_v2 = vmov 0.0|0.0  }
  0x2b   :  { %5022 = vmatprep.subr.bf16.mxu0 %v5310_v3  ;;  %v5347_v16 = vld [vmem:[#allocation5 + $0x18] sm:$0xff]  ;;  %v5354_v18 = vld [vmem:[#allocation2 + $0x48] sm:$0xff]  ;;  %v5358_v19 = vmul.f32 %v5345_v15, %v5325_v7  ;;  %v5364_v21 = vld [vmem:[#allocation5 + $0x20] sm:$0xff]  ;;  %v1598_v58 = vmul.f32 %v5339_v13, %v5339_v13  ;;  %v1599_v59 = vmul.f32 %v5352_v17, %v5352_v17  ;;  %4997 = vmatprep.subr.bf16.mxu1 %v5249_v2  ;;  %vm4181_vm7 = vcmask 1045509  }
  0x2c   :  { %v5362_v20 = vmul.f32 %v5347_v16, %v5327_v8  ;;  %v5366_v22 = vld [vmem:[#allocation5 + $0x28] sm:$0xff]  ;;  %v5368_v23 = vld [vmem:[#allocation2 + $0x50] sm:$0xff]  ;;  %v5370_v24 = vld [vmem:[#allocation2 + $0x58] sm:$0xff]  ;;  %v5375_v25 = vmul.f32 %v5364_v21, %v5329_v9  ;;  %v1600_v60 = vmul.f32 %v5354_v18, %v5354_v18  ;;  %vm4183_vm8 = vcmask 1046534  }
  0x2d   :  { %4578 = vmatmul.mubr.msk.f32.vlgmr.msra.gmra.mrb[0].mxu0 %vm81_vm0, %v5314_v4  ;;  %v5379_v26 = vmul.f32 %v5366_v22, %v5331_v10  ;;  %v5381_v27 = vld [vmem:[#allocation5 + $0x30] sm:$0xff]  ;;  %v5383_v28 = vld [vmem:[#allocation5 + $0x38] sm:$0xff]  ;;  %v5385_v29 = vld [vmem:[#allocation2 + $0x60] sm:$0xff]  ;;  %v1601_v61 = vmul.f32 %v5368_v23, %v5368_v23  ;;  %v1602_v62 = vmul.f32 %v5370_v24, %v5370_v24  ;;  %vm4185_vm9 = vcmask 1047559  }
  0x2e   :  { %5024 = vmatpush3.bf16.msra.mxu0 %v5310_v3  ;;  %4580 = vmatprep.mubr.msk.f32.mxu0 %vm81_vm0, %v5325_v7  ;;  %v5389_v30 = vmul.f32 %v5381_v27, %v5337_v12  ;;  %v5393_v31 = vmul.f32 %v5383_v28, %v5339_v13  ;;  %v5395_v32 = vld [vmem:[#allocation5 + $0x40] sm:$0xff]  ;;  %v5397_v33 = vld [vmem:[#allocation5 + $0x48] sm:$0xff]  ;;  %v5411_v37 = vld [vmem:[#allocation5 + $0x50] sm:$0xff]  ;;  %v1603_v63 = vmul.f32 %v5385_v29, %v5385_v29  ;;  %vm4188_vm10 = vcmask 48128  }
  0x2f   :  { %5050 = vmatprep.subr.bf16.mxu0 %v5310_v3  ;;  %v5401_v34 = vld [vmem:[#allocation2 + $0x68] sm:$0xff]  ;;  %v5405_v35 = vmul.f32 %v5395_v32, %v5352_v17  ;;  %v5409_v36 = vmul.f32 %v5397_v33, %v5354_v18  ;;  %v5413_v38 = vld [vmem:[#allocation5 + $0x58] sm:$0xff]  ;;  %v5417_v39 = vld [vmem:[#allocation2 + $0x70] sm:$0xff]  ;;  %v5421_v40 = vmul.f32 %v5411_v37, %v5368_v23  ;;  %v2360_v7 = vmul.f32 %v5333_v11, %v5333_v11 }
  0x30   :  { %v5425_v41 = vmul.f32 %v5413_v38, %v5370_v24  ;;  %v5427_v42 = vld [vmem:[#allocation5 + $0x60] sm:$0xff]  ;;  %v5429_v43 = vld [vmem:[#allocation5 + $0x68] sm:$0xff]  ;;  %v5431_v44 = vld [vmem:[#allocation2 + $0x78] sm:$0xff]  ;;  %v1604_v0 = vmul.f32 %v5401_v34, %v5401_v34  ;;  %v1605_v1 = vmul.f32 %v5417_v39, %v5417_v39  ;;  %vm4225_vm11 = vcmask 57344  }
  0x31   :  { %4581 = vmatmul.mubr.msk.f32.gmra.mrb[2].mxu0 %vm81_vm0, %v5327_v8  ;;  %v5435_v45 = vmul.f32 %v5427_v42, %v5385_v29  ;;  %v5439_v46 = vmul.f32 %v5429_v43, %v5401_v34  ;;  %v5441_v47 = vld [vmem:[#allocation5 + $0x70] sm:$0xff]  ;;  %v5443_v48 = vld [vmem:[#allocation5 + $0x78] sm:$0xff]  ;;  %v1606_v4 = vmul.f32 %v5431_v44, %v5431_v44  ;;  %v5251_v8 = vmov 0.0  }
  0x32   :  { %4583 = vmatprep.mubr.msk.f32.mxu0 %vm81_vm0, %v5329_v9  ;;  %v5447_v49 = vmul.f32 %v5441_v47, %v5417_v39  ;;  %v5451_v50 = vmul.f32 %v5443_v48, %v5431_v44  ;;  %4605 = vmatprep.mubr.msk.f32.mxu1 %vm5250_vm1, %v5251_v8  ;;  %v2361_v9 = vmul.f32 %v5316_v5, %v5316_v5 }
  0x35   :  { %4584 = vmatmul.mubr.msk.f32.gmra.mrb[4].mxu0 %vm81_vm0, %v5331_v10  ;;  %v2362_v10 = vmul.f32 %v5345_v15, %v5345_v15 }
  0x36   :  { %4586 = vmatprep.mubr.msk.f32.mxu0 %vm81_vm0, %v5337_v12  ;;  %v2364_v12 = vmul.f32 %v5364_v21, %v5364_v21 }
  0x39   :  { %4587 = vmatmul.mubr.msk.f32.gmra.mrb[6].mxu0 %vm81_vm0, %v5339_v13  ;;  %v2366_v13 = vmul.f32 %v5381_v27, %v5381_v27 }
  0x3a   :  { %4589 = vmatprep.mubr.msk.f32.mxu0 %vm81_vm0, %v5352_v17  ;;  %v2370_v17 = vmul.f32 %v5411_v37, %v5411_v37 }
  0x3d   :  { %4590 = vmatmul.mubr.msk.f32.gmra.mrb[8].mxu0 %vm81_vm0, %v5354_v18  ;;  %v2371_v18 = vmul.f32 %v5413_v38, %v5413_v38 }
  0x3e   :  { %4592 = vmatprep.mubr.msk.f32.mxu0 %vm81_vm0, %v5368_v23  ;;  %v2374_v23 = vmul.f32 %v5441_v47, %v5441_v47 }
  0x41   :  { %4593 = vmatmul.mubr.msk.f32.gmra.mrb[10].mxu0 %vm81_vm0, %v5370_v24  ;;  %v2375_v24 = vmul.f32 %v5443_v48, %v5443_v48 }
  0x42   :  { %4595 = vmatprep.mubr.msk.f32.mxu0 %vm81_vm0, %v5385_v29 }
  0x45   :  { %4596 = vmatmul.mubr.msk.f32.gmra.mrb[12].mxu0 %vm81_vm0, %v5401_v34 }
  0x46   :  { %4598 = vmatprep.mubr.msk.f32.mxu0 %vm81_vm0, %v5417_v39 }
  0x49   :  { %4599 = vmatmul.mubr.msk.f32.gmra.mrb[14].mxu0 %vm81_vm0, %v5431_v44 }
  0x4a   :  { %4661 = vmatprep.mubr.msk.f32.mxu0 %vm81_vm0, %v5333_v11  ;;  %v2363_v11 = vmul.f32 %v5347_v16, %v5347_v16 }
  0x4d   :  { %4662 = vmatmul.mubr.msk.f32.vlgmr.msra.gmra.mrb[16].mxu0 %vm81_vm0, %v5316_v5  ;;  %v2365_v5 = vmul.f32 %v5366_v22, %v5366_v22 }
  0x4e   :  { %5052 = vmatpush3.bf16.msra.mxu0 %v5310_v3  ;;  %4664 = vmatprep.mubr.msk.f32.mxu0 %vm81_vm0, %v5345_v15  ;;  %v2367_v15 = vmul.f32 %v5383_v28, %v5383_v28 }
  0x4f   :  { %5078 = vmatprep.subr.bf16.mxu0 %v5310_v3 }
  0x51   :  { %4665 = vmatmul.mubr.msk.f32.gmra.mrb[18].mxu0 %vm81_vm0, %v5347_v16  ;;  %v2369_v16 = vmul.f32 %v5397_v33, %v5397_v33 }
  0x52   :  { %4667 = vmatprep.mubr.msk.f32.mxu0 %vm81_vm0, %v5364_v21  ;;  %v2372_v21 = vmul.f32 %v5427_v42, %v5427_v42 }
  0x55   :  { %4668 = vmatmul.mubr.msk.f32.gmra.mrb[20].mxu0 %vm81_vm0, %v5366_v22  ;;  %v2373_v22 = vmul.f32 %v5429_v43, %v5429_v43 }
  0x56   :  { %4670 = vmatprep.mubr.msk.f32.mxu0 %vm81_vm0, %v5381_v27 }
  0x59   :  { %4671 = vmatmul.mubr.msk.f32.gmra.mrb[22].mxu0 %vm81_vm0, %v5383_v28 }
  0x5a   :  { %4673 = vmatprep.mubr.msk.f32.mxu0 %vm81_vm0, %v5395_v32 }
  0x5d   :  { %4674 = vmatmul.mubr.msk.f32.gmra.mrb[24].mxu0 %vm81_vm0, %v5397_v33 }
  0x5e   :  { %4676 = vmatprep.mubr.msk.f32.mxu0 %vm81_vm0, %v5411_v37 }
  0x61   :  { %4677 = vmatmul.mubr.msk.f32.gmra.mrb[26].mxu0 %vm81_vm0, %v5413_v38 }
  0x62   :  { %4679 = vmatprep.mubr.msk.f32.mxu0 %vm81_vm0, %v5427_v42 }
  0x65   :  { %4680 = vmatmul.mubr.msk.f32.gmra.mrb[28].mxu0 %vm81_vm0, %v5429_v43 }
  0x66   :  { %4682 = vmatprep.mubr.msk.f32.mxu0 %vm81_vm0, %v5441_v47 }
  0x69   :  { %4683 = vmatmul.mubr.msk.f32.gmra.mrb[30].mxu0 %vm81_vm0, %v5443_v48 }
  0x6a   :  { %4745 = vmatprep.mubr.msk.f32.mxu0 %vm81_vm0, %v1591_v51 }
  0x6d   :  { %4746 = vmatmul.mubr.msk.f32.vlgmr.msra.gmra.mrb[32].mxu0 %vm81_vm0, %v1592_v52 }
  0x6e   :  { %5080 = vmatpush3.bf16.msra.mxu0 %v5310_v3  ;;  %4748 = vmatprep.mubr.msk.f32.mxu0 %vm81_vm0, %v1593_v53 }
  0x6f   :  { %5106 = vmatprep.subr.bf16.mxu0 %v5310_v3 }
  0x71   :  { %4749 = vmatmul.mubr.msk.f32.gmra.mrb[34].mxu0 %vm81_vm0, %v1594_v54 }
  0x72   :  { %4751 = vmatprep.mubr.msk.f32.mxu0 %vm81_vm0, %v1595_v55 }
  0x75   :  { %4752 = vmatmul.mubr.msk.f32.gmra.mrb[36].mxu0 %vm81_vm0, %v1596_v56 }
  0x76   :  { %4754 = vmatprep.mubr.msk.f32.mxu0 %vm81_vm0, %v1597_v57 }
  0x79   :  { %4755 = vmatmul.mubr.msk.f32.gmra.mrb[38].mxu0 %vm81_vm0, %v1598_v58 }
  0x7a   :  { %4757 = vmatprep.mubr.msk.f32.mxu0 %vm81_vm0, %v1599_v59 }
  0x7d   :  { %4758 = vmatmul.mubr.msk.f32.gmra.mrb[40].mxu0 %vm81_vm0, %v1600_v60 }
  0x7e   :  { %4760 = vmatprep.mubr.msk.f32.mxu0 %vm81_vm0, %v1601_v61 }
  0x81   :  { %4761 = vmatmul.mubr.msk.f32.gmra.mrb[42].mxu0 %vm81_vm0, %v1602_v62 }
  0x82   :  { %4763 = vmatprep.mubr.msk.f32.mxu0 %vm81_vm0, %v1603_v63 }
  0x85   :  { %4764 = vmatmul.mubr.msk.f32.gmra.mrb[44].mxu0 %vm81_vm0, %v1604_v0 }
  0x86   :  { %4766 = vmatprep.mubr.msk.f32.mxu0 %vm81_vm0, %v1605_v1 }
  0x89   :  { %4767 = vmatmul.mubr.msk.f32.gmra.mrb[46].mxu0 %vm81_vm0, %v1606_v4 }
  0x8a   :  { %4829 = vmatprep.mubr.msk.f32.mxu0 %vm81_vm0, %v2360_v7 }
  0x8d   :  { %4830 = vmatmul.mubr.msk.f32.vlgmr.msra.gmra.mrb[48].mxu0 %vm81_vm0, %v2361_v9 }
  0x8e   :  { %5108 = vmatpush3.bf16.msra.mxu0 %v5310_v3  ;;  %4832 = vmatprep.mubr.msk.f32.mxu0 %vm81_vm0, %v2362_v10  ;;  %v2368_v3 = vmul.f32 %v5395_v32, %v5395_v32 }
  0x91   :  { %4833 = vmatmul.mubr.msk.f32.gmra.mrb[50].mxu0 %vm81_vm0, %v2363_v11 }
  0x92   :  { %4835 = vmatprep.mubr.msk.f32.mxu0 %vm81_vm0, %v2364_v12 }
  0x95   :  { %4836 = vmatmul.mubr.msk.f32.gmra.mrb[52].mxu0 %vm81_vm0, %v2365_v5 }
  0x96   :  { %4838 = vmatprep.mubr.msk.f32.mxu0 %vm81_vm0, %v2366_v13 }
  0x99   :  { %4839 = vmatmul.mubr.msk.f32.gmra.mrb[54].mxu0 %vm81_vm0, %v2367_v15 }
  0x9a   :  { %4841 = vmatprep.mubr.msk.f32.mxu0 %vm81_vm0, %v2368_v3 }
  0x9d   :  { %4842 = vmatmul.mubr.msk.f32.gmra.mrb[56].mxu0 %vm81_vm0, %v2369_v16 }
  0x9e   :  { %4844 = vmatprep.mubr.msk.f32.mxu0 %vm81_vm0, %v2370_v17 }
  0xa1   :  { %4845 = vmatmul.mubr.msk.f32.gmra.mrb[58].mxu0 %vm81_vm0, %v2371_v18 }
  0xa2   :  { %4847 = vmatprep.mubr.msk.f32.mxu0 %vm81_vm0, %v2372_v21 }
  0xa5   :  { %4848 = vmatmul.mubr.msk.f32.gmra.mrb[60].mxu0 %vm81_vm0, %v2373_v22 }
  0xa6   :  { %4850 = vmatprep.mubr.msk.f32.mxu0 %vm81_vm0, %v2374_v23 }
  0xa9   :  { %4851 = vmatmul.mubr.msk.f32.gmra.mrb[62].mxu0 %vm81_vm0, %v2375_v24 }
  0xaa   :  { %4913 = vmatprep.mubr.msk.f32.mxu0 %vm81_vm0, %v5343_v14 }
  0xad   :  { %4914 = vmatmul.mubr.msk.f32.vlgmr.msra.gmra.mrb[64].mxu0 %vm81_vm0, %v5320_v6 }
  0xae   :  { %4916 = vmatprep.mubr.msk.f32.mxu0 %vm81_vm0, %v5358_v19 }
  0xb1   :  { %4917 = vmatmul.mubr.msk.f32.gmra.mrb[66].mxu0 %vm81_vm0, %v5362_v20 }
  0xb2   :  { %4919 = vmatprep.mubr.msk.f32.mxu0 %vm81_vm0, %v5375_v25  ;;  %v5646_v25 = vld [vmem:[%s5996_s1] sm:$0x3f]  ;;  %s5252_s1 = smov [#allocation7]  }
  0xb3   :  { %s4233_s18 = sshll.u32 %s5252_s1, 4  ;;  %s4234_s18 = int_to_ptr.vmem [resolvable:$true] %s4233_s18 }
  0xb4   :  { %s5217_s19 = scalar_lea.vmem %s4234_s18, 16  ;;  %s5221_s20 = scalar_lea.vmem %s4234_s18, 32 }
  0xb5   :  { %4920 = vmatmul.mubr.msk.f32.gmra.mrb[68].mxu0 %vm81_vm0, %v5379_v26  ;;  %p5218_p2 = scmp.ne.s32.totalorder %s4234_s18, %s5217_s19  ;;  %p5222_p3 = scmp.lt.s32.totalorder %s4234_s18, %s4234_s18 }
  0xb6   :  { %4922 = vmatprep.mubr.msk.f32.mxu0 %vm81_vm0, %v5389_v30  ;;  %p5223_p4 = scmp.lt.s32.totalorder %s5221_s20, %s5217_s19 }
  0xb8   :  { %p5224_p5 = por %p5223_p4, %p5222_p3 }
  0xb9   :  { %4923 = vmatmul.mubr.msk.f32.gmra.mrb[70].mxu0 %vm81_vm0, %v5393_v31 }
  0xba   :  { %4925 = vmatprep.mubr.msk.f32.mxu0 %vm81_vm0, %v5405_v35  ;;  %p5225_p6 = pnand %p5224_p5, %p5218_p2 }
  0xbd   :  { %4926 = vmatmul.mubr.msk.f32.gmra.mrb[72].mxu0 %vm81_vm0, %v5409_v36 }
  0xbe   :  { %4928 = vmatprep.mubr.msk.f32.mxu0 %vm81_vm0, %v5421_v40 }
  0xc1   :  { %4929 = vmatmul.mubr.msk.f32.gmra.mrb[74].mxu0 %vm81_vm0, %v5425_v41 }
  0xc2   :  { %4931 = vmatprep.mubr.msk.f32.mxu0 %vm81_vm0, %v5435_v45 }
  0xc5   :  { %4932 = vmatmul.mubr.msk.f32.gmra.mrb[76].mxu0 %vm81_vm0, %v5439_v46 }
  0xc6   :  { %4934 = vmatprep.mubr.msk.f32.mxu0 %vm81_vm0, %v5447_v49 }
  0xc9   :  { %4935 = vmatmul.mubr.msk.f32.gmra.mrb[78].mxu0 %vm81_vm0, %v5451_v50 }
 0x100   :  { %v4579_v6 = vpop.f32.mrb[0].mxu0 }
 0x101   :  { %v196_v14 = vpop.f32.mrb[1].mxu0 }
 0x102   :  { %v4998_v19 = vpack.c.bf16 %v4579_v6, %v196_v14 }
 0x104   :  { %v4582_v20 = vpop.f32.mrb[2].mxu0  ;;  %4999 = vmatpush3.bf16.msra.mxu1 %v4998_v19 }
 0x105   :  { %v206_v26 = vpop.f32.mrb[3].mxu0  ;;  %5000 = vmatprep.subr.bf16.mxu1 %v5249_v2 }
 0x106   :  { %v5001_v27 = vpack.c.bf16 %v4582_v20, %v206_v26 }
 0x107   :  { %4606 = vmatmul.mubr.msk.f32.vlgmr.msra.gmra.mrb[0].mxu1 %vm81_vm0, %v5646_v25 }
 0x108   :  { %v4585_v28 = vpop.f32.mrb[4].mxu0  ;;  %5002 = vmatpush3.bf16.msra.mxu1 %v5001_v27  ;;  %4612 = vmatprep.mubr.msk.f32.mxu1 %vm5250_vm1, %v5251_v8 }
 0x109   :  { %v216_v29 = vpop.f32.mrb[5].mxu0  ;;  %5003 = vmatprep.subr.bf16.mxu1 %v5249_v2 }
 0x10a   :  { %v5004_v30 = vpack.c.bf16 %v4585_v28, %v216_v29 }
 0x10b   :  { %4613 = vmatmul.mubr.msk.f32.vlgmr.msra.gmra.mrb[2].mxu1 %vm81_vm0, %v5646_v25 }
 0x10c   :  { %v4588_v31 = vpop.f32.mrb[6].mxu0  ;;  %5005 = vmatpush3.bf16.msra.mxu1 %v5004_v30  ;;  %4619 = vmatprep.mubr.msk.f32.mxu1 %vm5250_vm1, %v5251_v8 }
 0x10d   :  { %v226_v32 = vpop.f32.mrb[7].mxu0  ;;  %5006 = vmatprep.subr.bf16.mxu1 %v5249_v2 }
 0x10e   :  { %v5007_v33 = vpack.c.bf16 %v4588_v31, %v226_v32 }
 0x10f   :  { %4620 = vmatmul.mubr.msk.f32.vlgmr.msra.gmra.mrb[4].mxu1 %vm81_vm0, %v5646_v25 }
 0x110   :  { %v4591_v34 = vpop.f32.mrb[8].mxu0  ;;  %5008 = vmatpush3.bf16.msra.mxu1 %v5007_v33  ;;  %4626 = vmatprep.mubr.msk.f32.mxu1 %vm5250_vm1, %v5251_v8 }
 0x111   :  { %v236_v35 = vpop.f32.mrb[9].mxu0  ;;  %5009 = vmatprep.subr.bf16.mxu1 %v5249_v2 }
 0x112   :  { %v5010_v36 = vpack.c.bf16 %v4591_v34, %v236_v35 }
 0x113   :  { %4627 = vmatmul.mubr.msk.f32.vlgmr.msra.gmra.mrb[6].mxu1 %vm81_vm0, %v5646_v25 }
 0x114   :  { %v4594_v37 = vpop.f32.mrb[10].mxu0  ;;  %5011 = vmatpush3.bf16.msra.mxu1 %v5010_v36  ;;  %4633 = vmatprep.mubr.msk.f32.mxu1 %vm5250_vm1, %v5251_v8 }
 0x115   :  { %v246_v38 = vpop.f32.mrb[11].mxu0  ;;  %5012 = vmatprep.subr.bf16.mxu1 %v5249_v2 }
 0x116   :  { %v5013_v39 = vpack.c.bf16 %v4594_v37, %v246_v38 }
 0x117   :  { %4634 = vmatmul.mubr.msk.f32.vlgmr.msra.gmra.mrb[8].mxu1 %vm81_vm0, %v5646_v25 }
 0x118   :  { %v4597_v40 = vpop.f32.mrb[12].mxu0  ;;  %5014 = vmatpush3.bf16.msra.mxu1 %v5013_v39  ;;  %4640 = vmatprep.mubr.msk.f32.mxu1 %vm5250_vm1, %v5251_v8 }
 0x119   :  { %v256_v41 = vpop.f32.mrb[13].mxu0  ;;  %5015 = vmatprep.subr.bf16.mxu1 %v5249_v2 }
 0x11a   :  { %v5016_v42 = vpack.c.bf16 %v4597_v40, %v256_v41 }
 0x11b   :  { %4641 = vmatmul.mubr.msk.f32.vlgmr.msra.gmra.mrb[10].mxu1 %vm81_vm0, %v5646_v25 }
 0x11c   :  { %v4600_v43 = vpop.f32.mrb[14].mxu0  ;;  %5017 = vmatpush3.bf16.msra.mxu1 %v5016_v42  ;;  %4647 = vmatprep.mubr.msk.f32.mxu1 %vm5250_vm1, %v5251_v8 }
 0x11d   :  { %v266_v44 = vpop.f32.mrb[15].mxu0  ;;  %5018 = vmatprep.subr.bf16.mxu1 %v5249_v2 }
 0x11e   :  { %v5019_v45 = vpack.c.bf16 %v4600_v43, %v266_v44 }
 0x11f   :  { %4648 = vmatmul.mubr.msk.f32.vlgmr.msra.gmra.mrb[12].mxu1 %vm81_vm0, %v5646_v25 }
 0x120   :  { %5020 = vmatpush3.bf16.msra.mxu1 %v5019_v45  ;;  %v4663_v46 = vpop.f32.mrb[16].mxu0  ;;  %4654 = vmatprep.mubr.msk.f32.mxu1 %vm5250_vm1, %v5251_v8 }
 0x121   :  { %v952_v47 = vpop.f32.mrb[17].mxu0  ;;  %5025 = vmatprep.subr.bf16.mxu1 %v5249_v2 }
 0x122   :  { %v5026_v48 = vpack.c.bf16 %v4663_v46, %v952_v47 }
 0x123   :  { %4655 = vmatmul.mubr.msk.f32.vlgmr.msra.gmra.mrb[14].mxu1 %vm81_vm0, %v5646_v25 }
 0x124   :  { %v4666_v49 = vpop.f32.mrb[18].mxu0  ;;  %5027 = vmatpush3.bf16.msra.mxu1 %v5026_v48  ;;  %4689 = vmatprep.mubr.msk.f32.mxu1 %vm5250_vm1, %v5251_v8 }
 0x125   :  { %v962_v50 = vpop.f32.mrb[19].mxu0  ;;  %5028 = vmatprep.subr.bf16.mxu1 %v5249_v2 }
 0x126   :  { %v5029_v51 = vpack.c.bf16 %v4666_v49, %v962_v50 }
 0x127   :  { %4690 = vmatmul.mubr.msk.f32.vlgmr.msra.gmra.mrb[16].mxu1 %vm81_vm0, %v5646_v25 }
 0x128   :  { %v4669_v52 = vpop.f32.mrb[20].mxu0  ;;  %5030 = vmatpush3.bf16.msra.mxu1 %v5029_v51  ;;  %4696 = vmatprep.mubr.msk.f32.mxu1 %vm5250_vm1, %v5251_v8 }
 0x129   :  { %v972_v53 = vpop.f32.mrb[21].mxu0  ;;  %5031 = vmatprep.subr.bf16.mxu1 %v5249_v2 }
 0x12a   :  { %v5032_v54 = vpack.c.bf16 %v4669_v52, %v972_v53 }
 0x12b   :  { %4697 = vmatmul.mubr.msk.f32.vlgmr.msra.gmra.mrb[18].mxu1 %vm81_vm0, %v5646_v25 }
 0x12c   :  { %v4672_v55 = vpop.f32.mrb[22].mxu0  ;;  %5033 = vmatpush3.bf16.msra.mxu1 %v5032_v54  ;;  %4703 = vmatprep.mubr.msk.f32.mxu1 %vm5250_vm1, %v5251_v8 }
 0x12d   :  { %v982_v56 = vpop.f32.mrb[23].mxu0  ;;  %5034 = vmatprep.subr.bf16.mxu1 %v5249_v2 }
 0x12e   :  { %v5035_v57 = vpack.c.bf16 %v4672_v55, %v982_v56 }
 0x12f   :  { %4704 = vmatmul.mubr.msk.f32.vlgmr.msra.gmra.mrb[20].mxu1 %vm81_vm0, %v5646_v25 }
 0x130   :  { %v4675_v58 = vpop.f32.mrb[24].mxu0  ;;  %5036 = vmatpush3.bf16.msra.mxu1 %v5035_v57  ;;  %4710 = vmatprep.mubr.msk.f32.mxu1 %vm5250_vm1, %v5251_v8 }
 0x131   :  { %v992_v59 = vpop.f32.mrb[25].mxu0  ;;  %5037 = vmatprep.subr.bf16.mxu1 %v5249_v2 }
 0x132   :  { %v5038_v60 = vpack.c.bf16 %v4675_v58, %v992_v59 }
 0x133   :  { %4711 = vmatmul.mubr.msk.f32.vlgmr.msra.gmra.mrb[22].mxu1 %vm81_vm0, %v5646_v25 }
 0x134   :  { %v4678_v61 = vpop.f32.mrb[26].mxu0  ;;  %5039 = vmatpush3.bf16.msra.mxu1 %v5038_v60  ;;  %4717 = vmatprep.mubr.msk.f32.mxu1 %vm5250_vm1, %v5251_v8 }
 0x135   :  { %v1002_v62 = vpop.f32.mrb[27].mxu0  ;;  %5040 = vmatprep.subr.bf16.mxu1 %v5249_v2 }
 0x136   :  { %v5041_v63 = vpack.c.bf16 %v4678_v61, %v1002_v62 }
 0x137   :  { %4718 = vmatmul.mubr.msk.f32.vlgmr.msra.gmra.mrb[24].mxu1 %vm81_vm0, %v5646_v25 }
 0x138   :  { %v4681_v0 = vpop.f32.mrb[28].mxu0  ;;  %5042 = vmatpush3.bf16.msra.mxu1 %v5041_v63  ;;  %4724 = vmatprep.mubr.msk.f32.mxu1 %vm5250_vm1, %v5251_v8 }
 0x139   :  { %v1012_v1 = vpop.f32.mrb[29].mxu0  ;;  %5043 = vmatprep.subr.bf16.mxu1 %v5249_v2 }
 0x13a   :  { %v5044_v4 = vpack.c.bf16 %v4681_v0, %v1012_v1 }
 0x13b   :  { %4725 = vmatmul.mubr.msk.f32.vlgmr.msra.gmra.mrb[26].mxu1 %vm81_vm0, %v5646_v25 }
 0x13c   :  { %v4684_v7 = vpop.f32.mrb[30].mxu0  ;;  %5045 = vmatpush3.bf16.msra.mxu1 %v5044_v4  ;;  %4731 = vmatprep.mubr.msk.f32.mxu1 %vm5250_vm1, %v5251_v8 }
 0x13d   :  { %v1022_v9 = vpop.f32.mrb[31].mxu0  ;;  %5046 = vmatprep.subr.bf16.mxu1 %v5249_v2 }
 0x13e   :  { %v5047_v10 = vpack.c.bf16 %v4684_v7, %v1022_v9 }
 0x13f   :  { %4732 = vmatmul.mubr.msk.f32.vlgmr.msra.gmra.mrb[28].mxu1 %vm81_vm0, %v5646_v25 }
 0x140   :  { %5048 = vmatpush3.bf16.msra.mxu1 %v5047_v10  ;;  %v4747_v11 = vpop.f32.mrb[32].mxu0  ;;  %4738 = vmatprep.mubr.msk.f32.mxu1 %vm5250_vm1, %v5251_v8 }
 0x141   :  { %v1721_v12 = vpop.f32.mrb[33].mxu0  ;;  %5053 = vmatprep.subr.bf16.mxu1 %v5249_v2 }
 0x142   :  { %v5054_v5 = vpack.c.bf16 %v4747_v11, %v1721_v12 }
 0x143   :  { %4739 = vmatmul.mubr.msk.f32.vlgmr.msra.gmra.mrb[30].mxu1 %vm81_vm0, %v5646_v25 }
 0x144   :  { %v4750_v13 = vpop.f32.mrb[34].mxu0  ;;  %5055 = vmatpush3.bf16.msra.mxu1 %v5054_v5  ;;  %4773 = vmatprep.mubr.msk.f32.mxu1 %vm5250_vm1, %v5251_v8 }
 0x145   :  { %v1731_v15 = vpop.f32.mrb[35].mxu0  ;;  %5056 = vmatprep.subr.bf16.mxu1 %v5249_v2 }
 0x146   :  { %v5057_v3 = vpack.c.bf16 %v4750_v13, %v1731_v15 }
 0x147   :  { %4774 = vmatmul.mubr.msk.f32.vlgmr.msra.gmra.mrb[32].mxu1 %vm81_vm0, %v5646_v25 }
 0x148   :  { %v4753_v16 = vpop.f32.mrb[36].mxu0  ;;  %5058 = vmatpush3.bf16.msra.mxu1 %v5057_v3  ;;  %4780 = vmatprep.mubr.msk.f32.mxu1 %vm5250_vm1, %v5251_v8 }
 0x149   :  { %v1741_v17 = vpop.f32.mrb[37].mxu0  ;;  %5059 = vmatprep.subr.bf16.mxu1 %v5249_v2 }
 0x14a   :  { %v5060_v18 = vpack.c.bf16 %v4753_v16, %v1741_v17 }
 0x14b   :  { %4781 = vmatmul.mubr.msk.f32.vlgmr.msra.gmra.mrb[34].mxu1 %vm81_vm0, %v5646_v25 }
 0x14c   :  { %v4756_v21 = vpop.f32.mrb[38].mxu0  ;;  %5061 = vmatpush3.bf16.msra.mxu1 %v5060_v18  ;;  %4787 = vmatprep.mubr.msk.f32.mxu1 %vm5250_vm1, %v5251_v8 }
 0x14d   :  { %v1751_v22 = vpop.f32.mrb[39].mxu0  ;;  %5062 = vmatprep.subr.bf16.mxu1 %v5249_v2 }
 0x14e   :  { %v5063_v23 = vpack.c.bf16 %v4756_v21, %v1751_v22 }
 0x14f   :  { %4788 = vmatmul.mubr.msk.f32.vlgmr.msra.gmra.mrb[36].mxu1 %vm81_vm0, %v5646_v25 }
 0x150   :  { %v4759_v24 = vpop.f32.mrb[40].mxu0  ;;  %5064 = vmatpush3.bf16.msra.mxu1 %v5063_v23  ;;  %4794 = vmatprep.mubr.msk.f32.mxu1 %vm5250_vm1, %v5251_v8 }
 0x151   :  { %v1761_v6 = vpop.f32.mrb[41].mxu0  ;;  %5065 = vmatprep.subr.bf16.mxu1 %v5249_v2 }
 0x152   :  { %v5066_v14 = vpack.c.bf16 %v4759_v24, %v1761_v6 }
 0x153   :  { %4795 = vmatmul.mubr.msk.f32.vlgmr.msra.gmra.mrb[38].mxu1 %vm81_vm0, %v5646_v25 }
 0x154   :  { %v4762_v19 = vpop.f32.mrb[42].mxu0  ;;  %5067 = vmatpush3.bf16.msra.mxu1 %v5066_v14  ;;  %4801 = vmatprep.mubr.msk.f32.mxu1 %vm5250_vm1, %v5251_v8 }
 0x155   :  { %v1771_v20 = vpop.f32.mrb[43].mxu0  ;;  %5068 = vmatprep.subr.bf16.mxu1 %v5249_v2 }
 0x156   :  { %v5069_v26 = vpack.c.bf16 %v4762_v19, %v1771_v20 }
 0x157   :  { %4802 = vmatmul.mubr.msk.f32.vlgmr.msra.gmra.mrb[40].mxu1 %vm81_vm0, %v5646_v25 }
 0x158   :  { %v4765_v27 = vpop.f32.mrb[44].mxu0  ;;  %5070 = vmatpush3.bf16.msra.mxu1 %v5069_v26  ;;  %4808 = vmatprep.mubr.msk.f32.mxu1 %vm5250_vm1, %v5251_v8 }
 0x159   :  { %v1781_v28 = vpop.f32.mrb[45].mxu0  ;;  %5071 = vmatprep.subr.bf16.mxu1 %v5249_v2 }
 0x15a   :  { %v5072_v29 = vpack.c.bf16 %v4765_v27, %v1781_v28 }
 0x15b   :  { %4809 = vmatmul.mubr.msk.f32.vlgmr.msra.gmra.mrb[42].mxu1 %vm81_vm0, %v5646_v25 }
 0x15c   :  { %v4768_v30 = vpop.f32.mrb[46].mxu0  ;;  %5073 = vmatpush3.bf16.msra.mxu1 %v5072_v29  ;;  %4815 = vmatprep.mubr.msk.f32.mxu1 %vm5250_vm1, %v5251_v8 }
 0x15d   :  { %v1791_v31 = vpop.f32.mrb[47].mxu0  ;;  %5074 = vmatprep.subr.bf16.mxu1 %v5249_v2 }
 0x15e   :  { %v5075_v32 = vpack.c.bf16 %v4768_v30, %v1791_v31 }
 0x15f   :  { %4816 = vmatmul.mubr.msk.f32.vlgmr.msra.gmra.mrb[44].mxu1 %vm81_vm0, %v5646_v25 }
 0x160   :  { %5076 = vmatpush3.bf16.msra.mxu1 %v5075_v32  ;;  %v4831_v33 = vpop.f32.mrb[48].mxu0  ;;  %4822 = vmatprep.mubr.msk.f32.mxu1 %vm5250_vm1, %v5251_v8 }
 0x161   :  { %v2490_v34 = vpop.f32.mrb[49].mxu0  ;;  %5081 = vmatprep.subr.bf16.mxu1 %v5249_v2 }
 0x162   :  { %v5082_v35 = vpack.c.bf16 %v4831_v33, %v2490_v34 }
 0x163   :  { %4823 = vmatmul.mubr.msk.f32.vlgmr.msra.gmra.mrb[46].mxu1 %vm81_vm0, %v5646_v25 }
 0x164   :  { %v4834_v36 = vpop.f32.mrb[50].mxu0  ;;  %5083 = vmatpush3.bf16.msra.mxu1 %v5082_v35  ;;  %4857 = vmatprep.mubr.msk.f32.mxu1 %vm5250_vm1, %v5251_v8 }
 0x165   :  { %v2500_v37 = vpop.f32.mrb[51].mxu0  ;;  %5084 = vmatprep.subr.bf16.mxu1 %v5249_v2 }
 0x166   :  { %v5085_v38 = vpack.c.bf16 %v4834_v36, %v2500_v37 }
 0x167   :  { %4858 = vmatmul.mubr.msk.f32.vlgmr.msra.gmra.mrb[48].mxu1 %vm81_vm0, %v5646_v25 }
 0x168   :  { %v4837_v39 = vpop.f32.mrb[52].mxu0  ;;  %5086 = vmatpush3.bf16.msra.mxu1 %v5085_v38  ;;  %4864 = vmatprep.mubr.msk.f32.mxu1 %vm5250_vm1, %v5251_v8 }
 0x169   :  { %v2510_v40 = vpop.f32.mrb[53].mxu0  ;;  %5087 = vmatprep.subr.bf16.mxu1 %v5249_v2 }
 0x16a   :  { %v5088_v41 = vpack.c.bf16 %v4837_v39, %v2510_v40 }
 0x16b   :  { %4865 = vmatmul.mubr.msk.f32.vlgmr.msra.gmra.mrb[50].mxu1 %vm81_vm0, %v5646_v25 }
 0x16c   :  { %v4840_v42 = vpop.f32.mrb[54].mxu0  ;;  %5089 = vmatpush3.bf16.msra.mxu1 %v5088_v41  ;;  %4871 = vmatprep.mubr.msk.f32.mxu1 %vm5250_vm1, %v5251_v8 }
 0x16d   :  { %v2520_v43 = vpop.f32.mrb[55].mxu0  ;;  %5090 = vmatprep.subr.bf16.mxu1 %v5249_v2 }
 0x16e   :  { %v5091_v44 = vpack.c.bf16 %v4840_v42, %v2520_v43 }
 0x16f   :  { %4872 = vmatmul.mubr.msk.f32.vlgmr.msra.gmra.mrb[52].mxu1 %vm81_vm0, %v5646_v25 }
 0x170   :  { %v4843_v45 = vpop.f32.mrb[56].mxu0  ;;  %5092 = vmatpush3.bf16.msra.mxu1 %v5091_v44  ;;  %4878 = vmatprep.mubr.msk.f32.mxu1 %vm5250_vm1, %v5251_v8 }
 0x171   :  { %v2530_v46 = vpop.f32.mrb[57].mxu0  ;;  %5093 = vmatprep.subr.bf16.mxu1 %v5249_v2 }
 0x172   :  { %v5094_v47 = vpack.c.bf16 %v4843_v45, %v2530_v46 }
 0x173   :  { %4879 = vmatmul.mubr.msk.f32.vlgmr.msra.gmra.mrb[54].mxu1 %vm81_vm0, %v5646_v25 }
 0x174   :  { %v4846_v48 = vpop.f32.mrb[58].mxu0  ;;  %5095 = vmatpush3.bf16.msra.mxu1 %v5094_v47  ;;  %4885 = vmatprep.mubr.msk.f32.mxu1 %vm5250_vm1, %v5251_v8 }
 0x175   :  { %v2540_v49 = vpop.f32.mrb[59].mxu0  ;;  %5096 = vmatprep.subr.bf16.mxu1 %v5249_v2 }
 0x176   :  { %v5097_v50 = vpack.c.bf16 %v4846_v48, %v2540_v49 }
 0x177   :  { %4886 = vmatmul.mubr.msk.f32.vlgmr.msra.gmra.mrb[56].mxu1 %vm81_vm0, %v5646_v25 }
 0x178   :  { %v4849_v51 = vpop.f32.mrb[60].mxu0  ;;  %5098 = vmatpush3.bf16.msra.mxu1 %v5097_v50  ;;  %4892 = vmatprep.mubr.msk.f32.mxu1 %vm5250_vm1, %v5251_v8 }
 0x179   :  { %v2550_v52 = vpop.f32.mrb[61].mxu0  ;;  %5099 = vmatprep.subr.bf16.mxu1 %v5249_v2 }
 0x17a   :  { %v5100_v53 = vpack.c.bf16 %v4849_v51, %v2550_v52 }
 0x17b   :  { %4893 = vmatmul.mubr.msk.f32.vlgmr.msra.gmra.mrb[58].mxu1 %vm81_vm0, %v5646_v25 }
 0x17c   :  { %v4852_v54 = vpop.f32.mrb[62].mxu0  ;;  %5101 = vmatpush3.bf16.msra.mxu1 %v5100_v53  ;;  %4899 = vmatprep.mubr.msk.f32.mxu1 %vm5250_vm1, %v5251_v8 }
 0x17d   :  { %v2560_v55 = vpop.f32.mrb[63].mxu0  ;;  %5102 = vmatprep.subr.bf16.mxu1 %v5249_v2 }
 0x17e   :  { %v5103_v56 = vpack.c.bf16 %v4852_v54, %v2560_v55 }
 0x17f   :  { %4900 = vmatmul.mubr.msk.f32.vlgmr.msra.gmra.mrb[60].mxu1 %vm81_vm0, %v5646_v25 }
 0x180   :  { %5104 = vmatpush3.bf16.msra.mxu1 %v5103_v56  ;;  %v4915_v57 = vpop.f32.mrb[64].mxu0  ;;  %4906 = vmatprep.mubr.msk.f32.mxu1 %vm5250_vm1, %v5251_v8 }
 0x181   :  { %v3259_v58 = vpop.f32.mrb[65].mxu0  ;;  %5109 = vmatprep.subr.bf16.mxu1 %v5249_v2 }
 0x182   :  { %v5110_v59 = vpack.c.bf16 %v4915_v57, %v3259_v58 }
 0x183   :  { %4907 = vmatmul.mubr.msk.f32.vlgmr.msra.gmra.mrb[62].mxu1 %vm81_vm0, %v5646_v25 }
 0x184   :  { %v4918_v60 = vpop.f32.mrb[66].mxu0  ;;  %5111 = vmatpush3.bf16.msra.mxu1 %v5110_v59  ;;  %4941 = vmatprep.mubr.msk.f32.mxu1 %vm5250_vm1, %v5251_v8 }
 0x185   :  { %v3269_v61 = vpop.f32.mrb[67].mxu0  ;;  %5112 = vmatprep.subr.bf16.mxu1 %v5249_v2 }
 0x186   :  { %v5113_v62 = vpack.c.bf16 %v4918_v60, %v3269_v61 }
 0x187   :  { %4942 = vmatmul.mubr.msk.f32.vlgmr.msra.gmra.mrb[64].mxu1 %vm81_vm0, %v5646_v25 }
 0x188   :  { %v4921_v63 = vpop.f32.mrb[68].mxu0  ;;  %5114 = vmatpush3.bf16.msra.mxu1 %v5113_v62  ;;  %4948 = vmatprep.mubr.msk.f32.mxu1 %vm5250_vm1, %v5251_v8 }
 0x189   :  { %v3279_v0 = vpop.f32.mrb[69].mxu0  ;;  %5115 = vmatprep.subr.bf16.mxu1 %v5249_v2 }
 0x18a   :  { %v5116_v1 = vpack.c.bf16 %v4921_v63, %v3279_v0 }
 0x18b   :  { %4949 = vmatmul.mubr.msk.f32.vlgmr.msra.gmra.mrb[66].mxu1 %vm81_vm0, %v5646_v25 }
 0x18c   :  { %v4924_v4 = vpop.f32.mrb[70].mxu0  ;;  %5117 = vmatpush3.bf16.msra.mxu1 %v5116_v1  ;;  %4955 = vmatprep.mubr.msk.f32.mxu1 %vm5250_vm1, %v5251_v8 }
 0x18d   :  { %v3289_v7 = vpop.f32.mrb[71].mxu0  ;;  %5118 = vmatprep.subr.bf16.mxu1 %v5249_v2 }
 0x18e   :  { %v5119_v9 = vpack.c.bf16 %v4924_v4, %v3289_v7 }
 0x18f   :  { %4956 = vmatmul.mubr.msk.f32.vlgmr.msra.gmra.mrb[68].mxu1 %vm81_vm0, %v5646_v25 }
 0x190   :  { %v4927_v10 = vpop.f32.mrb[72].mxu0  ;;  %5120 = vmatpush3.bf16.msra.mxu1 %v5119_v9  ;;  %4962 = vmatprep.mubr.msk.f32.mxu1 %vm5250_vm1, %v5251_v8 }
 0x191   :  { %v3299_v11 = vpop.f32.mrb[73].mxu0  ;;  %5121 = vmatprep.subr.bf16.mxu1 %v5249_v2 }
 0x192   :  { %v5122_v12 = vpack.c.bf16 %v4927_v10, %v3299_v11 }
 0x193   :  { %4963 = vmatmul.mubr.msk.f32.vlgmr.msra.gmra.mrb[70].mxu1 %vm81_vm0, %v5646_v25 }
 0x194   :  { %v4930_v5 = vpop.f32.mrb[74].mxu0  ;;  %5123 = vmatpush3.bf16.msra.mxu1 %v5122_v12  ;;  %4969 = vmatprep.mubr.msk.f32.mxu1 %vm5250_vm1, %v5251_v8 }
 0x195   :  { %v3309_v13 = vpop.f32.mrb[75].mxu0  ;;  %5124 = vmatprep.subr.bf16.mxu1 %v5249_v2 }
 0x196   :  { %v5125_v15 = vpack.c.bf16 %v4930_v5, %v3309_v13 }
 0x197   :  { %4970 = vmatmul.mubr.msk.f32.vlgmr.msra.gmra.mrb[72].mxu1 %vm81_vm0, %v5646_v25 }
 0x198   :  { %v4933_v3 = vpop.f32.mrb[76].mxu0  ;;  %5126 = vmatpush3.bf16.msra.mxu1 %v5125_v15  ;;  %4976 = vmatprep.mubr.msk.f32.mxu1 %vm5250_vm1, %v5251_v8 }
 0x199   :  { %v3319_v16 = vpop.f32.mrb[77].mxu0  ;;  %5127 = vmatprep.subr.bf16.mxu1 %v5249_v2 }
 0x19a   :  { %v5128_v17 = vpack.c.bf16 %v4933_v3, %v3319_v16 }
 0x19b   :  { %4977 = vmatmul.mubr.msk.f32.vlgmr.msra.gmra.mrb[74].mxu1 %vm81_vm0, %v5646_v25 }
 0x19c   :  { %v4936_v18 = vpop.f32.mrb[78].mxu0  ;;  %5129 = vmatpush3.bf16.msra.mxu1 %v5128_v17  ;;  %4983 = vmatprep.mubr.msk.f32.mxu1 %vm5250_vm1, %v5251_v8 }
 0x19d   :  { %v3329_v21 = vpop.f32.mrb[79].mxu0  ;;  %5130 = vmatprep.subr.bf16.mxu1 %v5249_v2 }
 0x19e   :  { %v5131_v22 = vpack.c.bf16 %v4936_v18, %v3329_v21 }
 0x19f   :  { %4984 = vmatmul.mubr.msk.f32.vlgmr.msra.gmra.mrb[76].mxu1 %vm81_vm0, %v5646_v25 }
 0x1a0   :  { %5132 = vmatpush3.bf16.msra.mxu1 %v5131_v22  ;;  %4990 = vmatprep.mubr.msk.f32.mxu1 %vm5250_vm1, %v5251_v8 }
 0x1a3   :  { %4991 = vmatmul.mubr.msk.f32.vlgmr.msra.gmra.mrb[78].mxu1 %vm81_vm0, %v5646_v25 }
 0x1da   :  { %v344_v23 = vpop.f32.mrb[0].mxu1 }
 0x1db   :  { %v4607_v24 = vpop.f32.mrb[1].mxu1  ;;  %v5849_v25 = vmul.f32 %v344_v23, %v344_v23 }
 0x1de   :  { %v414_v6 = vpop.f32.mrb[2].mxu1 }
 0x1df   :  { %v4614_v14 = vpop.f32.mrb[3].mxu1  ;;  %v5857_v40 = vmul.f32 %v414_v6, %v414_v6 }
 0x1e2   :  { %v484_v19 = vpop.f32.mrb[4].mxu1 }
 0x1e3   :  { %v4621_v20 = vpop.f32.mrb[5].mxu1  ;;  %v5865_v47 = vmul.f32 %v484_v19, %v484_v19 }
 0x1e6   :  { %v554_v26 = vpop.f32.mrb[6].mxu1 }
 0x1e7   :  { %v4628_v27 = vpop.f32.mrb[7].mxu1  ;;  %v5873_v54 = vmul.f32 %v554_v26, %v554_v26 }
 0x1ea   :  { %v624_v2 = vpop.f32.mrb[8].mxu1 }
 0x1eb   :  { %v4635_v28 = vpop.f32.mrb[9].mxu1  ;;  %v5881_v62 = vmul.f32 %v624_v2, %v624_v2 }
 0x1ee   :  { %v694_v29 = vpop.f32.mrb[10].mxu1 }
 0x1ef   :  { %v4642_v30 = vpop.f32.mrb[11].mxu1  ;;  %v5890_v13 = vmul.f32 %v694_v29, %v694_v29 }
 0x1f2   :  { %v5845_v31 = vpop.f32.mrb[12].mxu1 }
 0x1f3   :  { %v4649_v32 = vpop.f32.mrb[13].mxu1 }
 0x1f6   :  { %v5847_v33 = vpop.f32.mrb[14].mxu1 }
 0x1f7   :  { %v4656_v8 = vpop.f32.mrb[15].mxu1 }
 0x1fa   :  { %v1097_v34 = vpop.f32.mrb[16].mxu1 }
 0x1fb   :  { %v5851_v35 = vmul.f32 %v1097_v34, %v1097_v34  ;;  %v5853_v36 = vmul.f32 %v1097_v34, %v344_v23  ;;  %v4691_v37 = vpop.f32.mrb[17].mxu1 }
 0x1fd   :  { %v4042_v38 = vadd.f32 %v5851_v35, %v5849_v25  ;;  %v4026_v7 = vmul.f32 2.0, %v5853_v36 }
 0x1fe   :  { %v1167_v39 = vpop.f32.mrb[18].mxu1 }
 0x1ff   :  { %v4050_v41 = vadd.f32 0.0001, %v4042_v38  ;;  %v5859_v42 = vmul.f32 %v1167_v39, %v1167_v39  ;;  %v5861_v43 = vmul.f32 %v1167_v39, %v414_v6  ;;  %v4698_v44 = vpop.f32.mrb[19].mxu1  ;;  %v4034_v18 = vadd.f32 0.0001, %v4026_v7 }
 0x201   :  { %5141 = vrcp.f32 %v4050_v41  ;;  %v4043_v45 = vadd.f32 %v5859_v42, %v5857_v40  ;;  %v4027_v21 = vmul.f32 2.0, %v5861_v43 }
 0x202   :  { %v1237_v46 = vpop.f32.mrb[20].mxu1 }
 0x203   :  { %v4051_v48 = vadd.f32 0.0001, %v4043_v45  ;;  %v5867_v49 = vmul.f32 %v1237_v46, %v1237_v46  ;;  %v5869_v50 = vmul.f32 %v1237_v46, %v484_v19  ;;  %v4705_v51 = vpop.f32.mrb[21].mxu1  ;;  %v4035_v30 = vadd.f32 0.0001, %v4027_v21 }
 0x204   :  { %v5917_v45 = vmul.f32 %v5847_v33, %v5847_v33 }
 0x205   :  { %5143 = vrcp.f32 %v4051_v48  ;;  %v4044_v52 = vadd.f32 %v5867_v49, %v5865_v47  ;;  %v4028_v32 = vmul.f32 2.0, %v5869_v50 }
 0x206   :  { %v1307_v53 = vpop.f32.mrb[22].mxu1 }
 0x207   :  { %v4052_v55 = vadd.f32 0.0001, %v4044_v52  ;;  %v5875_v56 = vmul.f32 %v1307_v53, %v1307_v53  ;;  %v5877_v57 = vmul.f32 %v1307_v53, %v554_v26  ;;  %v4712_v58 = vpop.f32.mrb[23].mxu1  ;;  %v5903_v26 = vmul.f32 %v5845_v31, %v5845_v31 }
 0x208   :  { %v4036_v52 = vadd.f32 0.0001, %v4028_v32 }
 0x209   :  { %5145 = vrcp.f32 %v4052_v55  ;;  %v4045_v59 = vadd.f32 %v5875_v56, %v5873_v54  ;;  %v4029_v53 = vmul.f32 2.0, %v5877_v57 }
 0x20a   :  { %v1377_v60 = vpop.f32.mrb[24].mxu1 }
 0x20b   :  { %v5142_v61 = vpop.eup %5141  ;;  %v4053_v63 = vadd.f32 0.0001, %v4045_v59  ;;  %v5883_v0 = vmul.f32 %v1377_v60, %v1377_v60  ;;  %v5885_v1 = vmul.f32 %v1377_v60, %v624_v2  ;;  %v4719_v4 = vpop.f32.mrb[25].mxu1 }
 0x20c   :  { %v4066_v9 = vmul.f32 %v5142_v61, %v4050_v41 }
 0x20d   :  { %5147 = vrcp.f32 %v4053_v63  ;;  %v4046_v10 = vadd.f32 %v5883_v0, %v5881_v62 }
 0x20e   :  { %v4074_v11 = vsub.f32 2.0, %v4066_v9  ;;  %v1447_v12 = vpop.f32.mrb[26].mxu1 }
 0x20f   :  { %v5144_v5 = vpop.eup %5143  ;;  %v4054_v15 = vadd.f32 0.0001, %v4046_v10  ;;  %v5892_v3 = vmul.f32 %v1447_v12, %v1447_v12  ;;  %v5894_v16 = vmul.f32 %v1447_v12, %v694_v29  ;;  %v4726_v17 = vpop.f32.mrb[27].mxu1  ;;  %v4030_v12 = vmul.f32 2.0, %v5885_v1 }
 0x210   :  { %v4067_v22 = vmul.f32 %v5144_v5, %v4051_v48  ;;  %v4082_v23 = vmul.f32 %v5142_v61, %v4074_v11  ;;  %v4037_v11 = vadd.f32 0.0001, %v4029_v53 }
 0x211   :  { %5149 = vrcp.f32 %v4054_v15  ;;  %v4047_v24 = vadd.f32 %v5892_v3, %v5890_v13 }
 0x212   :  { %v4075_v6 = vsub.f32 2.0, %v4067_v22  ;;  %v1517_v14 = vpop.f32.mrb[28].mxu1  ;;  %v5899_v19 = vmul.f32 %v4082_v23, %v4034_v18 }
 0x213   :  { %v5146_v20 = vpop.eup %5145  ;;  %v4055_v27 = vadd.f32 0.0001, %v4047_v24  ;;  %v5905_v2 = vmul.f32 %v1517_v14, %v1517_v14  ;;  %v5908_v28 = vmul.f32 %v1517_v14, %v5845_v31  ;;  %v4733_v29 = vpop.f32.mrb[29].mxu1  ;;  %v4031_v14 = vmul.f32 2.0, %v5894_v16 }
 0x214   :  { %v4068_v8 = vmul.f32 %v5146_v20, %v4052_v55  ;;  %v4083_v34 = vmul.f32 %v5144_v5, %v4075_v6  ;;  %v4038_v6 = vadd.f32 0.0001, %v4030_v12 }
 0x215   :  { %5151 = vrcp.f32 %v4055_v27  ;;  %v4048_v37 = vadd.f32 %v5905_v2, %v5903_v26 }
 0x216   :  { %v4076_v38 = vsub.f32 2.0, %v4068_v8  ;;  %v1587_v39 = vpop.f32.mrb[30].mxu1  ;;  %v5913_v41 = vmul.f32 %v4083_v34, %v4035_v30 }
 0x217   :  { %v5148_v44 = vpop.eup %5147  ;;  %v4056_v31 = vadd.f32 0.0001, %v4048_v37  ;;  %v5919_v46 = vmul.f32 %v1587_v39, %v1587_v39  ;;  %v5922_v48 = vmul.f32 %v1587_v39, %v5847_v33  ;;  %v4740_v51 = vpop.f32.mrb[31].mxu1  ;;  %v4039_v37 = vadd.f32 0.0001, %v4031_v14 }
 0x218   :  { %v4069_v55 = vmul.f32 %v5148_v44, %v4053_v63  ;;  %v4084_v58 = vmul.f32 %v5146_v20, %v4076_v38  ;;  %v4032_v38 = vmul.f32 2.0, %v5908_v28 }
 0x219   :  { %5153 = vrcp.f32 %v4056_v31  ;;  %v4049_v59 = vadd.f32 %v5919_v46, %v5917_v45 }
 0x21a   :  { %v4077_v60 = vsub.f32 2.0, %v4069_v55  ;;  %v1866_v61 = vpop.f32.mrb[32].mxu1  ;;  %v5927_v4 = vmul.f32 %v4084_v58, %v4036_v52  ;;  %v4040_v58 = vadd.f32 0.0001, %v4032_v38 }
 0x21b   :  { %v5150_v7 = vpop.eup %5149  ;;  %v4057_v9 = vadd.f32 0.0001, %v4049_v59  ;;  %v3922_v10 = vsub.f32 %v1866_v61, %v5849_v25  ;;  %v4775_v33 = vpop.f32.mrb[33].mxu1  ;;  %v4033_v59 = vmul.f32 2.0, %v5922_v48 }
 0x21c   :  { %v4070_v5 = vmul.f32 %v5150_v7, %v4054_v15  ;;  %v4085_v17 = vmul.f32 %v5148_v44, %v4077_v60 }
 0x21d   :  { %5155 = vrcp.f32 %v4057_v9  ;;  %v4041_v12 = vadd.f32 0.0001, %v4033_v59 }
 0x21e   :  { %v4078_v63 = vsub.f32 2.0, %v4070_v5  ;;  %v1936_v18 = vpop.f32.mrb[34].mxu1  ;;  %v5931_v21 = vmul.f32 %v4085_v17, %v4037_v11 }
 0x21f   :  { %v5152_v22 = vpop.eup %5151  ;;  %v3923_v23 = vsub.f32 %v1936_v18, %v5857_v40  ;;  %v4782_v24 = vpop.f32.mrb[35].mxu1 }
 0x220   :  { %v4071_v20 = vmul.f32 %v5152_v22, %v4055_v27  ;;  %v4086_v25 = vmul.f32 %v5150_v7, %v4078_v63 }
 0x222   :  { %v4079_v29 = vsub.f32 2.0, %v4071_v20  ;;  %v2006_v30 = vpop.f32.mrb[36].mxu1  ;;  %v5935_v32 = vmul.f32 %v4086_v25, %v4038_v6 }
 0x223   :  { %v5154_v15 = vpop.eup %5153  ;;  %v3924_v8 = vsub.f32 %v2006_v30, %v5865_v47  ;;  %v4789_v34 = vpop.f32.mrb[37].mxu1 }
 0x224   :  { %v4072_v39 = vmul.f32 %v5154_v15, %v4056_v31  ;;  %v4087_v44 = vmul.f32 %v5152_v22, %v4079_v29 }
 0x226   :  { %v4080_v40 = vsub.f32 2.0, %v4072_v39  ;;  %v2076_v51 = vpop.f32.mrb[38].mxu1  ;;  %v5939_v52 = vmul.f32 %v4087_v44, %v4039_v37 }
 0x227   :  { %v5156_v53 = vpop.eup %5155  ;;  %v3925_v27 = vsub.f32 %v2076_v51, %v5873_v54  ;;  %v4796_v55 = vpop.f32.mrb[39].mxu1 }
 0x228   :  { %v4073_v60 = vmul.f32 %v5156_v53, %v4057_v9  ;;  %v4088_v61 = vmul.f32 %v5154_v15, %v4080_v40 }
 0x22a   :  { %v4081_v47 = vsub.f32 2.0, %v4073_v60  ;;  %v2146_v7 = vpop.f32.mrb[40].mxu1  ;;  %v5943_v33 = vmul.f32 %v4088_v61, %v4040_v58 }
 0x22b   :  { %v3926_v31 = vsub.f32 %v2146_v7, %v5881_v62  ;;  %v4803_v11 = vpop.f32.mrb[41].mxu1 }
 0x22c   :  { %v4089_v5 = vmul.f32 %v5156_v53, %v4081_v47 }
 0x22e   :  { %v2216_v17 = vpop.f32.mrb[42].mxu1  ;;  %v5946_v63 = vmul.f32 %v4089_v5, %v4041_v12 }
 0x22f   :  { %v3927_v54 = vsub.f32 %v2216_v17, %v5890_v13  ;;  %v4810_v18 = vpop.f32.mrb[43].mxu1 }
 0x232   :  { %v2286_v22 = vpop.f32.mrb[44].mxu1 }
 0x233   :  { %v3928_v24 = vsub.f32 %v2286_v22, %v5903_v26  ;;  %v4817_v9 = vpop.f32.mrb[45].mxu1 }
 0x236   :  { %v2356_v6 = vpop.f32.mrb[46].mxu1 }
 0x237   :  { %v3929_v14 = vsub.f32 %v2356_v6, %v5917_v45  ;;  %v4824_v20 = vpop.f32.mrb[47].mxu1 }
 0x23a   :  { %v2635_v25 = vpop.f32.mrb[48].mxu1 }
 0x23b   :  { %v3930_v62 = vsub.f32 %v2635_v25, %v5851_v35  ;;  %v4859_v29 = vpop.f32.mrb[49].mxu1 }
 0x23d   :  { %v3962_v30 = vadd.f32 %v3930_v62, %v3922_v10 }
 0x23e   :  { %v2705_v15 = vpop.f32.mrb[50].mxu1 }
 0x23f   :  { %v3931_v34 = vsub.f32 %v2705_v15, %v5859_v42  ;;  %v4866_v37 = vpop.f32.mrb[51].mxu1  ;;  %v3970_v40 = vadd.f32 0.0009, %v3962_v30 }
 0x241   :  { %v3963_v38 = vadd.f32 %v3931_v34, %v3923_v23  ;;  %5157 = vrcp.f32 %v3970_v40 }
 0x242   :  { %v2775_v13 = vpop.f32.mrb[52].mxu1 }
 0x243   :  { %v3932_v39 = vsub.f32 %v2775_v13, %v5867_v49  ;;  %v4873_v44 = vpop.f32.mrb[53].mxu1  ;;  %v3971_v35 = vadd.f32 0.0009, %v3963_v38 }
 0x245   :  { %v3964_v26 = vadd.f32 %v3932_v39, %v3924_v8  ;;  %5159 = vrcp.f32 %v3971_v35 }
 0x246   :  { %v2845_v51 = vpop.f32.mrb[54].mxu1 }
 0x247   :  { %v3933_v45 = vsub.f32 %v2845_v51, %v5875_v56  ;;  %v4880_v53 = vpop.f32.mrb[55].mxu1  ;;  %v3972_v42 = vadd.f32 0.0009, %v3964_v26 }
 0x249   :  { %v3965_v55 = vadd.f32 %v3933_v45, %v3925_v27  ;;  %5161 = vrcp.f32 %v3972_v42 }
 0x24a   :  { %v2915_v58 = vpop.f32.mrb[56].mxu1 }
 0x24b   :  { %v3934_v10 = vsub.f32 %v2915_v58, %v5883_v0  ;;  %v4887_v59 = vpop.f32.mrb[57].mxu1  ;;  %v3973_v8 = vadd.f32 0.0009, %v3965_v55  ;;  %v5158_v11 = vpop.eup %5157 }
 0x24c   :  { %v3986_v17 = vmul.f32 %v5158_v11, %v3970_v40 }
 0x24d   :  { %v3966_v60 = vadd.f32 %v3934_v10, %v3926_v31  ;;  %5163 = vrcp.f32 %v3973_v8 }
 0x24e   :  { %v2985_v23 = vpop.f32.mrb[58].mxu1 }
 0x24f   :  { %v3935_v49 = vsub.f32 %v2985_v23, %v5892_v3  ;;  %v4894_v61 = vpop.f32.mrb[59].mxu1  ;;  %v3974_v12 = vadd.f32 0.0009, %v3966_v60  ;;  %v5160_v22 = vpop.eup %5159 }
 0x250   :  { %v3987_v25 = vmul.f32 %v5160_v22, %v3971_v35 }
 0x251   :  { %v3967_v47 = vadd.f32 %v3935_v49, %v3927_v54  ;;  %5165 = vrcp.f32 %v3974_v12  ;;  %v3994_v54 = vsub.f32 2.0, %v3986_v17 }
 0x252   :  { %v3055_v7 = vpop.f32.mrb[60].mxu1  ;;  %v3995_v37 = vsub.f32 2.0, %v3987_v25 }
 0x253   :  { %v3936_v56 = vsub.f32 %v3055_v7, %v5905_v2  ;;  %v4901_v27 = vpop.f32.mrb[61].mxu1  ;;  %v3975_v3 = vadd.f32 0.0009, %v3967_v47  ;;  %v5162_v20 = vpop.eup %5161  ;;  %v4002_v38 = vmul.f32 %v5158_v11, %v3994_v54 }
 0x254   :  { %v4003_v55 = vmul.f32 %v5160_v22, %v3995_v37 }
 0x255   :  { %v3968_v5 = vadd.f32 %v3936_v56, %v3928_v24  ;;  %5167 = vrcp.f32 %v3975_v3  ;;  %v3988_v24 = vmul.f32 %v5162_v20, %v3972_v42 }
 0x256   :  { %v3125_v0 = vpop.f32.mrb[62].mxu1 }
 0x257   :  { %v3937_v31 = vsub.f32 %v3125_v0, %v5919_v46  ;;  %v4908_v18 = vpop.f32.mrb[63].mxu1  ;;  %v3976_v29 = vadd.f32 0.0009, %v3968_v5  ;;  %v5164_v34 = vpop.eup %5163  ;;  %v3996_v40 = vsub.f32 2.0, %v3988_v24 }
 0x258   :  { %v3989_v51 = vmul.f32 %v5164_v34, %v3973_v8 }
 0x259   :  { %v3969_v9 = vadd.f32 %v3937_v31, %v3929_v14  ;;  %5169 = vrcp.f32 %v3976_v29  ;;  %v4004_v49 = vmul.f32 %v5162_v20, %v3996_v40 }
 0x25a   :  { %v3404_v6 = vpop.f32.mrb[64].mxu1  ;;  %v3997_v60 = vsub.f32 2.0, %v3989_v51 }
 0x25b   :  { %v3938_v2 = vsub.f32 %v3404_v6, %v5853_v36  ;;  %v4943_v62 = vpop.f32.mrb[65].mxu1  ;;  %v3977_v14 = vadd.f32 0.0009, %v3969_v9  ;;  %v5166_v45 = vpop.eup %5165 }
 0x25c   :  { %v3990_v23 = vmul.f32 %v5166_v45, %v3974_v12 }
 0x25d   :  { %v3946_v30 = vmul.f32 2.0, %v3938_v2  ;;  %5171 = vrcp.f32 %v3977_v14 }
 0x25e   :  { %v3474_v15 = vpop.f32.mrb[66].mxu1  ;;  %v3998_v17 = vsub.f32 2.0, %v3990_v23 }
 0x25f   :  { %v3954_v46 = vadd.f32 0.0009, %v3946_v30  ;;  %v3939_v13 = vsub.f32 %v3474_v15, %v5861_v43  ;;  %v4950_v39 = vpop.f32.mrb[67].mxu1  ;;  %v5168_v47 = vpop.eup %5167 }
 0x260   :  { %v3991_v31 = vmul.f32 %v5168_v47, %v3975_v3 }
 0x261   :  { %v4010_v44 = vmul.f32 %v4002_v38, %v3954_v46  ;;  %v3947_v26 = vmul.f32 2.0, %v3939_v13 }
 0x262   :  { %v3544_v36 = vpop.f32.mrb[68].mxu1  ;;  %v3999_v62 = vsub.f32 2.0, %v3991_v31 }
 0x263   :  { %v3955_v53 = vadd.f32 0.0009, %v3947_v26  ;;  %v3940_v35 = vsub.f32 %v3544_v36, %v5869_v50  ;;  %v4957_v58 = vpop.f32.mrb[69].mxu1  ;;  %v4018_v10 = vmax.f32 %v4010_v44, 0.0  ;;  %v5170_v12 = vpop.eup %5169 }
 0x264   :  { %v3992_v30 = vmul.f32 %v5170_v12, %v3976_v29 }
 0x265   :  { %v4011_v59 = vmul.f32 %v4003_v55, %v3955_v53  ;;  %v3948_v42 = vmul.f32 2.0, %v3940_v35  ;;  %v4098_v43 = vmul.f32 %v5899_v19, %v4018_v10  ;;  %v4005_v19 = vmul.f32 %v5164_v34, %v3997_v60 }
 0x266   :  { %v3614_v61 = vpop.f32.mrb[70].mxu1  ;;  %v4000_v44 = vsub.f32 2.0, %v3992_v30 }
 0x267   :  { %v4019_v8 = vmax.f32 %v4011_v59, 0.0  ;;  %v3956_v7 = vadd.f32 0.0009, %v3948_v42  ;;  %v3941_v56 = vsub.f32 %v3614_v61, %v5877_v57  ;;  %v4964_v27 = vpop.f32.mrb[71].mxu1  ;;  %v4107_v50 = vsel %vm4106_vm2, %v4098_v43, 0.0  ;;  %v5172_v3 = vpop.eup %5171 }
 0x268   :  { %4108 = vadd.xlane.f32.xlu0 %v4107_v50  ;;  %v3993_v26 = vmul.f32 %v5172_v3, %v3977_v14  ;;  %v4008_v10 = vmul.f32 %v5170_v12, %v4000_v44 }
 0x269   :  { %v4012_v11 = vmul.f32 %v4004_v49, %v3956_v7  ;;  %v3949_v5 = vmul.f32 2.0, %v3941_v56  ;;  %v4099_v0 = vmul.f32 %v5913_v41, %v4019_v8  ;;  %v4006_v41 = vmul.f32 %v5166_v45, %v3998_v17 }
 0x26a   :  { %v3684_v18 = vpop.f32.mrb[72].mxu1  ;;  %v4001_v58 = vsub.f32 2.0, %v3993_v26 }
 0x26b   :  { %v3957_v22 = vadd.f32 0.0009, %v3949_v5  ;;  %v3942_v9 = vsub.f32 %v3684_v18, %v5885_v1  ;;  %v4971_v6 = vpop.f32.mrb[73].mxu1  ;;  %v4110_v20 = vsel %vm4106_vm2, %v4099_v0, 0.0  ;;  %v4020_v57 = vmax.f32 %v4012_v11, 0.0 }
 0x26c   :  { %4111 = vadd.xlane.f32.xlu0 %v4110_v20  ;;  %v4009_v8 = vmul.f32 %v5172_v3, %v4001_v58 }
 0x26d   :  { %v4013_v54 = vmul.f32 %v4005_v19, %v3957_v22  ;;  %v3950_v25 = vmul.f32 2.0, %v3942_v9  ;;  %v4100_v2 = vmul.f32 %v5927_v4, %v4020_v57  ;;  %v4007_v4 = vmul.f32 %v5168_v47, %v3999_v62 }
 0x26e   :  { %v3754_v24 = vpop.f32.mrb[74].mxu1 }
 0x26f   :  { %v4021_v15 = vmax.f32 %v4013_v54, 0.0  ;;  %v3958_v34 = vadd.f32 0.0009, %v3950_v25  ;;  %v3943_v37 = vsub.f32 %v3754_v24, %v5894_v16  ;;  %v4978_v46 = vpop.f32.mrb[75].mxu1  ;;  %v4113_v1 = vsel %vm4106_vm2, %v4100_v2, 0.0 }
 0x270   :  { %4114 = vadd.xlane.f32.xlu1 %v4113_v1 }
 0x271   :  { %v4014_v38 = vmul.f32 %v4006_v41, %v3958_v34  ;;  %v3951_v13 = vmul.f32 2.0, %v3943_v37  ;;  %v4101_v39 = vmul.f32 %v5931_v21, %v4021_v15 }
 0x272   :  { %v3824_v40 = vpop.f32.mrb[76].mxu1 }
 0x273   :  { %v4022_v29 = vmax.f32 %v4014_v38, 0.0  ;;  %v3959_v51 = vadd.f32 0.0009, %v3951_v13  ;;  %v3944_v36 = vsub.f32 %v3824_v40, %v5908_v28  ;;  %v4985_v45 = vpop.f32.mrb[77].mxu1  ;;  %v4116_v53 = vsel %vm4106_vm2, %v4101_v39, 0.0 }
 0x274   :  { %4117 = vadd.xlane.f32.xlu1 %v4116_v53 }
 0x275   :  { %v4015_v16 = vmul.f32 %v4007_v4, %v3959_v51  ;;  %v3952_v55 = vmul.f32 2.0, %v3944_v36  ;;  %v4102_v35 = vmul.f32 %v5935_v32, %v4022_v29 }
 0x276   :  { %v3894_v59 = vpop.f32.mrb[78].mxu1 }
 0x277   :  { %v4023_v21 = vmax.f32 %v4015_v16, 0.0  ;;  %v3960_v42 = vadd.f32 0.0009, %v3952_v55  ;;  %v3945_v14 = vsub.f32 %v3894_v59, %v5922_v48  ;;  %v4992_v43 = vpop.f32.mrb[79].mxu1  ;;  %v4119_v60 = vsel %vm4106_vm2, %v4102_v35, 0.0 }
 0x278   :  { %4120 = vadd.xlane.f32.xlu0 %v4119_v60 }
 0x279   :  { %v4016_v28 = vmul.f32 %v4008_v10, %v3960_v42  ;;  %v3953_v23 = vmul.f32 2.0, %v3945_v14  ;;  %v4103_v49 = vmul.f32 %v5939_v52, %v4023_v21  ;;  %v4139_v52 = vlaneseq }
 0x27b   :  { %v4024_v61 = vmax.f32 %v4016_v28, 0.0  ;;  %v3961_v47 = vadd.f32 0.0009, %v3953_v23  ;;  %v4122_v32 = vsel %vm4106_vm2, %v4103_v49, 0.0  ;;  %v4140_v17 = vand.u32 127, %v4139_v52 }
 0x27c   :  { %4123 = vadd.xlane.f32.xlu1 %v4122_v32  ;;  %v4142_v31 = vshrl.u32 %v4139_v52, 7 }
 0x27d   :  { %v4017_v7 = vmul.f32 %v4009_v8, %v3961_v47  ;;  %v4104_v56 = vmul.f32 %v5943_v33, %v4024_v61 }
 0x27e   :  { %v4143_v12 = vsub.s32 %v4140_v17, %v4142_v31 }
 0x27f   :  { %v4025_v27 = vmax.f32 %v4017_v7, 0.0  ;;  %v4125_v48 = vsel %vm4106_vm2, %v4104_v56, 0.0 }
 0x280   :  { %4126 = vadd.xlane.f32.xlu0 %v4125_v48 }
 0x281   :  { %v4105_v50 = vmul.f32 %v5946_v63, %v4025_v27 }
 0x283   :  { %v4128_v11 = vsel %vm4106_vm2, %v4105_v50, 0.0 }
 0x284   :  { %4129 = vadd.xlane.f32.xlu1 %v4128_v11 }
 0x2f5   :  { %v4109_v5 = vpop.xlane.xlu0 %4108 }
 0x2f6   :  { %v4144_v20 = vrot.slane %v4109_v5, %v4143_v12 }
 0x2f9   :  { %v4112_v19 = vpop.xlane.xlu0 %4111 }
 0x2fa   :  { %v4148_v9 = vrot.slane %v4112_v19, %v4143_v12 }
 0x2fc   :  { %v4174_v25 = vsel %vm4173_vm3, %v4148_v9, %v4144_v20 }
 0x2fd   :  { %v4115_v0 = vpop.xlane.xlu1 %4114 }
 0x2fe   :  { %v4152_v33 = vrot.slane %v4115_v0, %v4143_v12 }
 0x300   :  { %v4176_v62 = vsel %vm4175_vm4, %v4152_v33, %v4174_v25 }
 0x301   :  { %v4118_v18 = vpop.xlane.xlu1 %4117 }
 0x302   :  { %v4156_v57 = vrot.slane %v4118_v18, %v4143_v12 }
 0x304   :  { %v4178_v41 = vsel %vm4177_vm5, %v4156_v57, %v4176_v62 }
 0x305   :  { %v4121_v22 = vpop.xlane.xlu0 %4120 }
 0x306   :  { %v4160_v63 = vrot.slane %v4121_v22, %v4143_v12 }
 0x308   :  { %v4180_v24 = vsel %vm4179_vm6, %v4160_v63, %v4178_v41 }
 0x309   :  { %v4124_v6 = vpop.xlane.xlu1 %4123 }
 0x30a   :  { %v4164_v2 = vrot.slane %v4124_v6, %v4143_v12 }
 0x30c   :  { %v4182_v15 = vsel %vm4181_vm7, %v4164_v2, %v4180_v24 }
 0x30d   :  { %v4127_v54 = vpop.xlane.xlu0 %4126 }
 0x30e   :  { %v4168_v30 = vrot.slane %v4127_v54, %v4143_v12 }
 0x310   :  { %v4184_v37 = vsel %vm4183_vm8, %v4168_v30, %v4182_v15 }
 0x311   :  { %v4130_v3 = vpop.xlane.xlu1 %4129 }
 0x312   :  { %v4172_v34 = vrot.slane %v4130_v3, %v4143_v12 }
 0x314   :  { %v4186_v46 = vsel %vm4185_vm9, %v4172_v34, %v4184_v37 }
 0x315   :  { %v4189_v1 = vsel %vm4188_vm10, %v4186_v46, 0.0 }
 0x316   :  { %4190 = vadd.xlane.f32.xlu0 %v4189_v1 }
 0x3a3   :  { %v4191_v38 = vpop.xlane.xlu0 %4190 }
 0x3a4   :  { %4192 = vxpose.xlu1.b32.start.end [1/1] (short) (narrow) %v4191_v38, 8 }
 0x424   :  { %v4208_v13 = vpop.trf.xlu1 }
 0x425   :  { %v4224_v39 = vmul.f32 0.027777778, %v4208_v13 }
 0x427   :  { %4226 = vst.msk [vmem:[#allocation7] sm:$0x1] %vm4225_vm11, %v4224_v39 }
 0x428   :  { %5228 = shalt.err (!%p5225_p6)
}
 0x429   :  { %s5229_s23 = scalar_lea.hbm %s5999_s4, 16 }
 0x42a   :  { %p5230_p7 = scmp.ne.s32.totalorder %s5999_s4, %s5229_s23  ;;  %p5233_p8 = scmp.lt.u32.totalorder %s5229_s23, %s5999_s4 }
 0x42c   :  { %p5235_p9 = pnand %p5233_p8, %p5230_p7 }
 0x42e   :  { %5238 = shalt.err (!%p5235_p9)
}
 0x42f   :  { %4236 = dma.vmem_to_hbm [thread:$0]  %s4234_s18, 16, %s5999_s4, [#allocation4]  }
 0x430   :  { %5243 = dma.done.wait [#allocation4], 16  }
 0x431   :  { %5244 = vsyncadd [#allocation4], 4294967280 }
 0x432   :  { %4240 = vsyncpa [#allocation3], 1 }
 0x433   :  { %4241 = vsyncpa [#allocation6], 1 }
 0x434   :  { %4242 = vsyncpa [#allocation4], 1 }

</bundles_post_ra>
